<compile_context>
chip_gen: v7x
topology: tpu7x:2x2x1
jax: 0.10.0
libtpu: 0.0.40
codegen_flags: <defaults>
</compile_context>

<pallas_src>
import functools
import math

import jax
import jax.numpy as jnp
from jax import lax
from jax.experimental import pallas as pl
from jax.experimental.pallas import tpu as pltpu

LANE = 128


def _round_up(x, m):
    return ((x + m - 1) // m) * m


def _pick_tile(n_pad, max_tile):
    """Largest multiple of 32 that divides n_pad and is <= max_tile."""
    t = min(max_tile, n_pad)
    t -= t % 32
    while t >= 32:
        if n_pad % t == 0:
            return t
        t -= 32
    return n_pad          # n_pad is always a multiple of 128


def _vmem_spec():
    return pl.BlockSpec(memory_space=pltpu.MemorySpace.VMEM)


# ----------------------------------------------------------------------------
# Row-tiled linear (bf16 operands, f32 accumulation, lane-dense output)
# ----------------------------------------------------------------------------
def _linear_kernel(x_ref, w_ref, b_ref, o_ref):
    o_ref[...] = (
        jnp.dot(x_ref[...], w_ref[...], preferred_element_type=jnp.float32)
        + b_ref[...]
    )


def linear_pallas(x, w, b, *, out_pad=LANE, row_tile=128):
    """y = x @ w + b, row-tiled over nodes; bf16 operand streams with f32 MXU
    accumulation; output columns zero-padded to a lane-dense 128 multiple."""
    m, k = x.shape
    k2, n = w.shape
    assert k == k2
    n_p = max(out_pad, _round_up(n, LANE))
    m_p = _round_up(m, row_tile)
    x_p = jnp.pad(x.astype(jnp.float32), ((0, m_p - m), (0, 0))).astype(jnp.bfloat16)
    w_p = jnp.pad(w.astype(jnp.float32), ((0, 0), (0, n_p - n))).astype(jnp.bfloat16)
    b_p = jnp.pad(b.astype(jnp.float32), (0, n_p - n)).reshape(1, n_p)
    out = pl.pallas_call(
        _linear_kernel,
        out_shape=jax.ShapeDtypeStruct((m_p, n_p), jnp.float32),
        grid_spec=pltpu.PrefetchScalarGridSpec(
            num_scalar_prefetch=0,
            grid=(m_p // row_tile,),
            in_specs=[
                pl.BlockSpec((row_tile, k), lambda i: (i, 0)),
                pl.BlockSpec((k, n_p), lambda i: (0, 0)),
                pl.BlockSpec((1, n_p), lambda i: (0, 0)),
            ],
            out_specs=pl.BlockSpec((row_tile, n_p), lambda i: (i, 0)),
        ),
        compiler_params=pltpu.CompilerParams(dimension_semantics=("parallel",)),
    )(x_p, w_p, b_p)
    return out[:m]          # keep the lane-padded columns


# ----------------------------------------------------------------------------
# Per-row standardisation (torch mean / unbiased std, NaN -> 0), row-tiled
# ----------------------------------------------------------------------------
def _standardize_kernel(x_ref, o_ref, *, real_d):
    x = x_ref[...]
    lane = lax.broadcasted_iota(jnp.int32, x.shape, 1)
    valid = lane < real_d                                   # mask padded lanes
    mean = jnp.sum(jnp.where(valid, x, 0.0), axis=1, keepdims=True) / real_d
    c = jnp.where(valid, x - mean, 0.0)
    # torch.std default: unbiased estimator (ddof = 1)
    var = jnp.sum(c * c, axis=1, keepdims=True) / (real_d - 1)
    y = c / jnp.sqrt(var)
    o_ref[...] = jnp.where(jnp.isnan(y), 0.0, y)


def standardize_rows_pallas(x, *, real_d, row_tile=128):
    m, d = x.shape
    assert m % row_tile == 0
    return pl.pallas_call(
        functools.partial(_standardize_kernel, real_d=real_d),
        out_shape=jax.ShapeDtypeStruct((m, d), jnp.float32),
        grid_spec=pltpu.PrefetchScalarGridSpec(
            num_scalar_prefetch=0,
            grid=(m // row_tile,),
            in_specs=[pl.BlockSpec((row_tile, d), lambda i: (i, 0))],
            out_specs=pl.BlockSpec((row_tile, d), lambda i: (i, 0)),
        ),
        compiler_params=pltpu.CompilerParams(dimension_semantics=("parallel",)),
    )(x.astype(jnp.float32))


# ----------------------------------------------------------------------------
# Fused relational propagation + total-variation: one pass over raw int8 A
# ----------------------------------------------------------------------------
def _fused_prop_tv_kernel(a_ref, x_ref, y_ref, p_ref, tv_ref, *, tile):
    """One (relation, row-tile) step.

    Outputs (per relation r, row tile i):
      P[r, i]     = A_r[i, :] @ X                  (raw; D^-1 applied outside)
      tv_cross[r] += sum_rows( Y[i] * (A_r[i, :] @ Y) ),  Y = D_r^-1/2 X
    """
    i = pl.program_id(1)
    # int8 0/1 adjacency -> exact bf16 (the HBM stream is 1 byte/entry; the
    # convert is VPU filler hidden under the DMA shadow).
    a = a_ref[0].astype(jnp.float32).astype(jnp.bfloat16)        # (tile, N_pad)

    # propagation partial (full-K single dot, f32 accumulation)
    p_ref[...] = jnp.dot(a, x_ref[...],
                         preferred_element_type=jnp.float32)[None]

    # total-variation cross term for this row tile
    m2 = jnp.dot(a, y_ref[0], preferred_element_type=jnp.float32)  # (tile, d)
    row0 = pl.multiple_of(i * tile, tile)
    y_i = y_ref[0, pl.ds(row0, tile), :].astype(jnp.float32)       # (tile, d)

    @pl.when(i == 0)
    def _():
        tv_ref[...] = jnp.zeros_like(tv_ref)

    tv_ref[...] += jnp.sum(y_i * m2, axis=0, keepdims=True)[None]


def fused_prop_tv_pallas(a_int8, x_bf16, y_bf16, *, tile):
    """Single pass over the raw int8 adjacency producing, per relation:
      * P_raw[r]     = A_r @ X                       (N_pad, 128) f32
      * tv_cross[r]  = per-feature sums of (D^-1/2 X) . (A_r D^-1/2 X)
    Grid = (R, N_pad/tile): relation axis 'parallel' (v7x megacore), row axis
    is the trailing reduction axis for the tv accumulator."""
    r_dim, n_pad, _ = a_int8.shape
    d = x_bf16.shape[-1]
    assert n_pad % tile == 0
    nt = n_pad // tile
    # VMEM budget: double-buffered int8 A row-block, resident X / Y (bf16),
    # the P output block, plus f32/bf16 temporaries of the 0/1 convert.
    need = (2 * (tile * n_pad + 2 * n_pad * d * 2 + tile * d * 4 + d * 4)
            + tile * n_pad * 6)
    vmem_limit = min(max(int(1.5 * need), 32 * 1024 * 1024), 56 * 1024 * 1024)
    return pl.pallas_call(
        functools.partial(_fused_prop_tv_kernel, tile=tile),
        out_shape=(jax.ShapeDtypeStruct((r_dim, n_pad, d), jnp.float32),
                   jax.ShapeDtypeStruct((r_dim, 1, d), jnp.float32)),
        grid_spec=pltpu.PrefetchScalarGridSpec(
            num_scalar_prefetch=0,
            grid=(r_dim, nt),
            in_specs=[
                pl.BlockSpec((1, tile, n_pad), lambda r, i: (r, i, 0)),
                pl.BlockSpec((n_pad, d), lambda r, i: (0, 0)),     # X resident
                pl.BlockSpec((1, n_pad, d), lambda r, i: (r, 0, 0)),  # Y_r
            ],
            out_specs=[
                pl.BlockSpec((1, tile, d), lambda r, i: (r, i, 0)),
                pl.BlockSpec((1, 1, d), lambda r, i: (r, 0, 0)),
            ],
        ),
        compiler_params=pltpu.CompilerParams(
            dimension_semantics=("parallel", "arbitrary"),
            vmem_limit_bytes=vmem_limit),
    )(a_int8, x_bf16, y_bf16)


# ----------------------------------------------------------------------------
# Fused PairNorm + output linear (activation is only (N_pad, 128) f32)
# ----------------------------------------------------------------------------
def _pairnorm_linear_kernel(x_ref, w_ref, b_ref, o_ref, *, scale, eps, real_n):
    # TODO(synk): batch_norm(..., 'pair', ...) class not provided; standard
    # PairNorm (center over nodes, scale by mean row norm) is used, fused with
    # the OneLayerNet output linear (dropout == 0 -> identity).
    x = x_ref[...]
    row = lax.broadcasted_iota(jnp.int32, x.shape, 0)
    valid = row < real_n                                    # mask padded rows
    col_mean = jnp.sum(jnp.where(valid, x, 0.0), axis=0, keepdims=True) / real_n
    xc = jnp.where(valid, x - col_mean, 0.0)
    mean_sq_norm = jnp.sum(xc * xc) / real_n
    y = (scale / jnp.sqrt(eps + mean_sq_norm)) * xc
    o_ref[...] = (
        jnp.dot(y, w_ref[...], preferred_element_type=jnp.float32) + b_ref[...]
    )


def pairnorm_linear_pallas(x, w_pad, b_pad, *, real_n, scale=1.0, eps=1e-6):
    n_pad, d_pad = x.shape
    return pl.pallas_call(
        functools.partial(_pairnorm_linear_kernel, scale=scale, eps=eps,
                          real_n=real_n),
        out_shape=jax.ShapeDtypeStruct((n_pad, d_pad), jnp.float32),
        in_specs=[_vmem_spec(), _vmem_spec(), _vmem_spec()],
        out_specs=_vmem_spec(),
        compiler_params=pltpu.CompilerParams(
            vmem_limit_bytes=48 * 1024 * 1024),
    )(x, w_pad, b_pad)


# ----------------------------------------------------------------------------
# MRGNN forward (mirrors the PyTorch control flow; fully on-device under jit)
# ----------------------------------------------------------------------------
def make_mrgnn_forward(*, num_relations, alpha, beta, threshold, threshold_c,
                       slice_col, hm_dim, num_classes, real_n, n_pad,
                       node_tile, lin_tile=128, max_outer=50, max_inner=200):
    """Builds a jitted MRGNN forward.  n_pad = round_up(N, 128); node_tile must
    divide n_pad (at N~4264 -> n_pad=4352, node_tile=544 is a good choice)."""
    assert n_pad % node_tile == 0 and n_pad % lin_tile == 0
    d_pad = LANE
    two_ba = 2.0 * beta / alpha
    inv1 = 1.0 / (1.0 + alpha)

    def forward(params, x, a_int8, dinv, dsqinv):
        # transfer() with transf_type == 2: i2h Linear per source, concat.
        feats = [x[:, slice_col:], params["gene_emb"]]
        hs = [linear_pallas(f, w, b, out_pad=d_pad, row_tile=lin_tile)
              for f, w, b in zip(feats, params["i2h_w"], params["i2h_b"])]
        h = jnp.concatenate(hs, axis=0)                    # (real_n, d_pad)
        h = jnp.pad(h, ((0, n_pad - real_n), (0, 0)))      # pad node rows

        # per-node standardisation (mean / unbiased std), NaN -> 0
        output_ = standardize_rows_pallas(h, real_d=hm_dim, row_tile=lin_tile)
        H = output_

        def fused_pass(out_f32):
            """One stream of the raw adjacency -> (prop partials, TV values)."""
            xb = out_f32.astype(jnp.bfloat16)
            yb = (dsqinv[:, :, None] * out_f32[None]).astype(jnp.bfloat16)
            p_raw, tv_cross = fused_prop_tv_pallas(a_int8, xb, yb,
                                                   tile=node_tile)
            # TODO(synk): reference `calculate_relational_totalvariation` not
            # provided; the standard Laplacian total variation
            # tr(X^T (I - D^-1/2 A D^-1/2) X) is used.
            w = jnp.sum(out_f32 * out_f32) - jnp.sum(tv_cross, axis=-1)
            return p_raw, w                               # (R,N,128), (R,1)

        u0 = jnp.full((num_relations, 1), 1.0 / num_relations, jnp.float32)
        P0, w0 = fused_pass(output_)
        c_l1tr = jnp.sum(jnp.abs(w0))

        def inner_mwu(u, w, fi):
            # on-device do/while multiplicative-weights update of u
            def cond(c):
                _, _, cv, it = c
                return jnp.logical_and(
                    it < max_inner,
                    jnp.logical_or(it == 0, cv >= threshold_c))

            def body(c):
                u, t, _, it = c
                T_t = jnp.sqrt(2.0 * math.log(num_relations) / (t * fi * fi))
                f_de = two_ba * u + w
                u_ta = u * jnp.exp(-T_t * f_de)
                u_new = u_ta / jnp.sum(u_ta)
                cv = jnp.sqrt(jnp.sum(jnp.square(u - u_new)))
                return (u_new, t + 1.0, cv, it + 1)

            u_f, _, _, _ = lax.while_loop(
                cond, body,
                (u, jnp.float32(11.0), jnp.float32(0.0), jnp.int32(0)))
            return u_f

        def outer_cond(c):
            _, _, _, _, done, it = c
            return jnp.logical_and(jnp.logical_not(done), it < max_outer)

        def outer_body(c):
            output, P, u, w, _, it = c
            l1tr = jnp.sum(jnp.abs(w))
            fi = l1tr + two_ba
            u_new = inner_mwu(u, w, fi)
            done = (l1tr / c_l1tr) < threshold

            def step():
                # afw = sum_r u_r * (D_r^-1 A_r X) using the fused-pass
                # partials; u is applied after the MWU step (cheap elementwise)
                afw = jnp.sum(
                    u_new[:, 0][:, None, None] * dinv[:, :, None] * P, axis=0)
                out_new = inv1 * H + (alpha * inv1) * afw
                P_new, w_new = fused_pass(out_new)
                return out_new, P_new, w_new

            out_new, P_new, w_new = lax.cond(
                done, lambda: (output, P, w), step)
            return (out_new, P_new, u_new, w_new, done, it + 1)

        # TODO(synk): the reference outer loop has no explicit bound
        # (`while c_l1tr >= 0`); max_outer is a safety cap.
        output, _, _, _, _, _ = lax.while_loop(
            outer_cond, outer_body,
            (output_, P0, u0, w0, jnp.bool_(False), jnp.int32(0)))

        embeddings = output[:real_n, :hm_dim]

        # fused 'pair' norm + OneLayerNet output linear (lane-padded weights)
        out_w = jnp.pad(params["out_w"].astype(jnp.float32),
                        ((0, d_pad - hm_dim), (0, d_pad - num_classes)))
        out_b = jnp.pad(params["out_b"].astype(jnp.float32),
                        (0, d_pad - num_classes)).reshape(1, d_pad)
        logits = pairnorm_linear_pallas(output, out_w, out_b, real_n=real_n)
        return logits[:real_n, :num_classes], embeddings

    return jax.jit(forward)


# ----------------------------------------------------------------------------
# Deterministic synthetic setup
# ----------------------------------------------------------------------------
if __name__ == "__main__":
    # Small synthetic shapes standing in for the original sizes (4264, 1613, ...),
    # chosen so the fused kernel exercises a multi-tile (R, nt) grid.
    N_X = 96            # nodes from the raw feature source x
    F_X = 24            # raw feature dim of x
    SLICE_COL = 8       # stands in for the hard-coded x[:, 1613:]
    G = 96              # gene_emb is (G, G)   (original 4264 x 4264)
    HM_DIM = 16         # self.hm_dim, working embedding dim (lane-padded to 128)
    H_DIM = 32          # self.h_dim (only used by unused transf_type branches)
    NUM_NODES = N_X + G
    NUM_RELATIONS = 3
    NUM_CLASSES = 4
    ALPHA, BETA = 10.0, 1.0
    THRESHOLD, THRESHOLD_C = 0.95, 5e-2
    N_EDGES = 256
    N_PAD = _round_up(NUM_NODES, LANE)            # minimal (lane-multiple) padding
    NODE_TILE = _pick_tile(N_PAD, max_tile=128)   # use max_tile~544-1088 at N~4264

    key = jax.random.PRNGKey(0)
    keys = jax.random.split(key, 12)
    in_dims = [F_X - SLICE_COL, G]

    def kaiming(k, shape):
        fan_in = shape[0]
        return jax.random.normal(k, shape, jnp.float32) * math.sqrt(2.0 / fan_in)

    params = {
        "gene_emb": jax.random.normal(keys[0], (G, G), jnp.float32),
        # unused for transf_type == 2, kept for parity with __init__
        "node_embeddings": kaiming(keys[1], (NUM_NODES, H_DIM)),
        "linear_w": kaiming(keys[2], (H_DIM, H_DIM)),
        "linear_b": jnp.zeros((H_DIM,), jnp.float32),
        # i2h: one Linear(in_dims[i], hm_dim) per feature source
        "i2h_w": [kaiming(keys[3], (in_dims[0], HM_DIM)),
                  kaiming(keys[4], (in_dims[1], HM_DIM))],
        "i2h_b": [jnp.zeros((HM_DIM,), jnp.float32),
                  jnp.zeros((HM_DIM,), jnp.float32)],
        "out_w": kaiming(keys[5], (HM_DIM, NUM_CLASSES)),
        "out_b": jnp.zeros((NUM_CLASSES,), jnp.float32),
    }

    x = jax.random.normal(keys[6], (N_X, F_X), jnp.float32)

    # triples -> dense vertically-stacked relational adjacency (R, N, N)
    src = jax.random.randint(keys[7], (N_EDGES,), 0, NUM_NODES)
    dst = jax.random.randint(keys[8], (N_EDGES,), 0, NUM_NODES)
    rel = jax.random.randint(keys[9], (N_EDGES,), 0, NUM_RELATIONS)
    A = jnp.zeros((NUM_RELATIONS, NUM_NODES, NUM_NODES), jnp.float32)
    A = A.at[rel, src, dst].set(1.0)
    # TODO(synk): generate_inverses() shifts relation ids by num_relations; here
    # we symmetrise within the same relation so the stacked adjacency keeps the
    # (num_relations * num_nodes, num_nodes) layout used by forward().
    A = A.at[rel, dst, src].set(1.0)

    # Exact scale trick: the streamed operator stays the raw 0/1 adjacency in
    # int8; D^-1 folds the sum_sparse row normalisation (propagation) and
    # D^-1/2 folds the calc_L_hat symmetric normalisation (total variation).
    deg = jnp.sum(A, axis=-1)                                   # (R, N)
    safe = jnp.where(deg > 0, deg, 1.0)
    dinv = jnp.where(deg > 0, 1.0 / safe, 0.0)
    dsqinv = jnp.where(deg > 0, 1.0 / jnp.sqrt(safe), 0.0)

    pad = N_PAD - NUM_NODES
    a_int8 = jnp.pad(A, ((0, 0), (0, pad), (0, pad))).astype(jnp.int8)
    dinv = jnp.pad(dinv, ((0, 0), (0, pad)))
    dsqinv = jnp.pad(dsqinv, ((0, 0), (0, pad)))

    fwd = make_mrgnn_forward(
        num_relations=NUM_RELATIONS, alpha=ALPHA, beta=BETA,
        threshold=THRESHOLD, threshold_c=THRESHOLD_C, slice_col=SLICE_COL,
        hm_dim=HM_DIM, num_classes=NUM_CLASSES, real_n=NUM_NODES, n_pad=N_PAD,
        node_tile=NODE_TILE, lin_tile=128)

    logits, embeddings = fwd(params, x, a_int8, dinv, dsqinv)
    jax.block_until_ready((logits, embeddings))
    assert logits.shape == (NUM_NODES, NUM_CLASSES)
    assert embeddings.shape == (NUM_NODES, HM_DIM)
    assert bool(jnp.all(jnp.isfinite(logits)))
    print("KERNEL_OK")
</pallas_src>

<mosaic_0001>
module attributes {stable_mosaic.version = 11 : i64} {
  func.func @_linear_kernel(%arg0: i32, %arg1: memref<128x96xbf16, #tpu.memory_space<vmem>>, %arg2: memref<96x128xbf16, #tpu.memory_space<vmem>>, %arg3: memref<1x128xf32, #tpu.memory_space<vmem>>, %arg4: memref<128x128xf32, #tpu.memory_space<vmem>>) attributes {dimension_semantics = [#tpu.dimension_semantics<parallel>], iteration_bounds = array<i64: 1>, scalar_prefetch = 0 : i64, scratch_operands = 0 : i64, tpu.core_type = #tpu.core_type<tc>, window_params = [{transform_indices = @transform_0, window_bounds = array<i64: 128, 96>}, {pipeline_mode = #tpu.pipeline_mode<synchronous>, transform_indices = @transform_1, window_bounds = array<i64: 96, 128>}, {pipeline_mode = #tpu.pipeline_mode<synchronous>, transform_indices = @transform_2, window_bounds = array<i64: 1, 128>}, {transform_indices = @transform_3, window_bounds = array<i64: 128, 128>}]} {
    %c0 = arith.constant 0 : index
    %c0_0 = arith.constant 0 : index
    %0 = vector.load %arg1[%c0, %c0_0] : memref<128x96xbf16, #tpu.memory_space<vmem>>, vector<128x96xbf16>
    %c0_1 = arith.constant 0 : index
    %c0_2 = arith.constant 0 : index
    %1 = vector.load %arg2[%c0_1, %c0_2] : memref<96x128xbf16, #tpu.memory_space<vmem>>, vector<96x128xbf16>
    %cst = arith.constant dense<0.000000e+00> : vector<128x128xf32>
    %2 = tpu.matmul %0, %1, %cst {dimension_numbers = #tpu.dot_dimension_numbers<[1], [0], [0], [1], [0, 0, 1, 1], [], []>} : vector<128x96xbf16>, vector<96x128xbf16>, vector<128x128xf32> -> vector<128x128xf32>
    %c0_3 = arith.constant 0 : index
    %c0_4 = arith.constant 0 : index
    %3 = vector.load %arg3[%c0_3, %c0_4] : memref<1x128xf32, #tpu.memory_space<vmem>>, vector<1x128xf32>
    %4 = vector.broadcast %3 : vector<1x128xf32> to vector<128x128xf32>
    %5 = arith.addf %2, %4 : vector<128x128xf32>
    %c0_5 = arith.constant 0 : index
    %c0_6 = arith.constant 0 : index
    %6 = vector.load %arg4[%c0_5, %c0_6] : memref<128x128xf32, #tpu.memory_space<vmem>>, vector<128x128xf32>
    tpu.vector_store %arg4[%c0_5, %c0_6], %5 {strides = array<i32>} : memref<128x128xf32, #tpu.memory_space<vmem>>, vector<128x128xf32>,
    return
  }
  func.func @transform_0(%arg0: i32) -> (i32, i32) {
    %c0_i32 = arith.constant 0 : i32
    %c0_i32_0 = arith.constant 0 : i32
    return %arg0, %c0_i32 : i32, i32
  }
  func.func @transform_1(%arg0: i32) -> (i32, i32) {
    %c0_i32 = arith.constant 0 : i32
    %c0_i32_0 = arith.constant 0 : i32
    %c0_i32_1 = arith.constant 0 : i32
    return %c0_i32, %c0_i32_0 : i32, i32
  }
  func.func @transform_2(%arg0: i32) -> (i32, i32) {
    %c0_i32 = arith.constant 0 : i32
    %c0_i32_0 = arith.constant 0 : i32
    %c0_i32_1 = arith.constant 0 : i32
    return %c0_i32, %c0_i32_0 : i32, i32
  }
  func.func @transform_3(%arg0: i32) -> (i32, i32) {
    %c0_i32 = arith.constant 0 : i32
    %c0_i32_0 = arith.constant 0 : i32
    return %arg0, %c0_i32 : i32, i32
  }
}

module attributes {stable_mosaic.version = 11 : i64} {
  func.func @_linear_kernel(%arg0: i32, %arg1: memref<128x16xbf16, #tpu.memory_space<vmem>>, %arg2: memref<16x128xbf16, #tpu.memory_space<vmem>>, %arg3: memref<1x128xf32, #tpu.memory_space<vmem>>, %arg4: memref<128x128xf32, #tpu.memory_space<vmem>>) attributes {dimension_semantics = [#tpu.dimension_semantics<parallel>], iteration_bounds = array<i64: 1>, scalar_prefetch = 0 : i64, scratch_operands = 0 : i64, tpu.core_type = #tpu.core_type<tc>, window_params = [{transform_indices = @transform_0, window_bounds = array<i64: 128, 16>}, {pipeline_mode = #tpu.pipeline_mode<synchronous>, transform_indices = @transform_1, window_bounds = array<i64: 16, 128>}, {pipeline_mode = #tpu.pipeline_mode<synchronous>, transform_indices = @transform_2, window_bounds = array<i64: 1, 128>}, {transform_indices = @transform_3, window_bounds = array<i64: 128, 128>}]} {
    %c0 = arith.constant 0 : index
    %c0_0 = arith.constant 0 : index
    %0 = vector.load %arg1[%c0, %c0_0] : memref<128x16xbf16, #tpu.memory_space<vmem>>, vector<128x16xbf16>
    %c0_1 = arith.constant 0 : index
    %c0_2 = arith.constant 0 : index
    %1 = vector.load %arg2[%c0_1, %c0_2] : memref<16x128xbf16, #tpu.memory_space<vmem>>, vector<16x128xbf16>
    %cst = arith.constant dense<0.000000e+00> : vector<128x128xf32>
    %2 = tpu.matmul %0, %1, %cst {dimension_numbers = #tpu.dot_dimension_numbers<[1], [0], [0], [1], [0, 0, 1, 1], [], []>} : vector<128x16xbf16>, vector<16x128xbf16>, vector<128x128xf32> -> vector<128x128xf32>
    %c0_3 = arith.constant 0 : index
    %c0_4 = arith.constant 0 : index
    %3 = vector.load %arg3[%c0_3, %c0_4] : memref<1x128xf32, #tpu.memory_space<vmem>>, vector<1x128xf32>
    %4 = vector.broadcast %3 : vector<1x128xf32> to vector<128x128xf32>
    %5 = arith.addf %2, %4 : vector<128x128xf32>
    %c0_5 = arith.constant 0 : index
    %c0_6 = arith.constant 0 : index
    %6 = vector.load %arg4[%c0_5, %c0_6] : memref<128x128xf32, #tpu.memory_space<vmem>>, vector<128x128xf32>
    tpu.vector_store %arg4[%c0_5, %c0_6], %5 {strides = array<i32>} : memref<128x128xf32, #tpu.memory_space<vmem>>, vector<128x128xf32>,
    return
  }
  func.func @transform_0(%arg0: i32) -> (i32, i32) {
    %c0_i32 = arith.constant 0 : i32
    %c0_i32_0 = arith.constant 0 : i32
    return %arg0, %c0_i32 : i32, i32
  }
  func.func @transform_1(%arg0: i32) -> (i32, i32) {
    %c0_i32 = arith.constant 0 : i32
    %c0_i32_0 = arith.constant 0 : i32
    %c0_i32_1 = arith.constant 0 : i32
    return %c0_i32, %c0_i32_0 : i32, i32
  }
  func.func @transform_2(%arg0: i32) -> (i32, i32) {
    %c0_i32 = arith.constant 0 : i32
    %c0_i32_0 = arith.constant 0 : i32
    %c0_i32_1 = arith.constant 0 : i32
    return %c0_i32, %c0_i32_0 : i32, i32
  }
  func.func @transform_3(%arg0: i32) -> (i32, i32) {
    %c0_i32 = arith.constant 0 : i32
    %c0_i32_0 = arith.constant 0 : i32
    return %arg0, %c0_i32 : i32, i32
  }
}

module attributes {stable_mosaic.version = 11 : i64} {
  func.func @_standardize_kernel(%arg0: i32, %arg1: memref<128x128xf32, #tpu.memory_space<vmem>>, %arg2: memref<128x128xf32, #tpu.memory_space<vmem>>) attributes {dimension_semantics = [#tpu.dimension_semantics<parallel>], iteration_bounds = array<i64: 2>, scalar_prefetch = 0 : i64, scratch_operands = 0 : i64, tpu.core_type = #tpu.core_type<tc>, window_params = [{transform_indices = @transform_0, window_bounds = array<i64: 128, 128>}, {transform_indices = @transform_1, window_bounds = array<i64: 128, 128>}]} {
    %c0 = arith.constant 0 : index
    %c0_0 = arith.constant 0 : index
    %0 = vector.load %arg1[%c0, %c0_0] : memref<128x128xf32, #tpu.memory_space<vmem>>, vector<128x128xf32>
    %1 = tpu.iota {dimensions = array<i32: 1>} : vector<128x128xi32>
    %c16_i32 = arith.constant 16 : i32
    %2 = vector.broadcast %c16_i32 : i32 to vector<128x128xi32>
    %3 = arith.cmpi slt, %1, %2 : vector<128x128xi32>
    %cst = arith.constant 0.000000e+00 : f32
    %4 = vector.broadcast %cst : f32 to vector<128x128xf32>
    %5 = arith.select %3, %0, %4 : vector<128x128xi1>, vector<128x128xf32>
    %cst_1 = arith.constant dense<0.000000e+00> : vector<128xf32>
    %6 = vector.multi_reduction <add>, %5, %cst_1 [1] : vector<128x128xf32> to vector<128xf32>
    %7 = vector.shape_cast %6 : vector<128xf32> to vector<128x1xf32>
    %cst_2 = arith.constant 1.600000e+01 : f32
    %8 = vector.broadcast %cst_2 : f32 to vector<128x1xf32>
    %9 = arith.divf %7, %8 : vector<128x1xf32>
    %10 = vector.broadcast %9 : vector<128x1xf32> to vector<128x128xf32>
    %11 = arith.subf %0, %10 : vector<128x128xf32>
    %cst_3 = arith.constant 0.000000e+00 : f32
    %12 = vector.broadcast %cst_3 : f32 to vector<128x128xf32>
    %13 = arith.select %3, %11, %12 : vector<128x128xi1>, vector<128x128xf32>
    %14 = arith.mulf %13, %13 : vector<128x128xf32>
    %cst_4 = arith.constant dense<0.000000e+00> : vector<128xf32>
    %15 = vector.multi_reduction <add>, %14, %cst_4 [1] : vector<128x128xf32> to vector<128xf32>
    %16 = vector.shape_cast %15 : vector<128xf32> to vector<128x1xf32>
    %cst_5 = arith.constant 1.500000e+01 : f32
    %17 = vector.broadcast %cst_5 : f32 to vector<128x1xf32>
    %18 = arith.divf %16, %17 : vector<128x1xf32>
    %19 = math.sqrt %18 : vector<128x1xf32>
    %20 = vector.broadcast %19 : vector<128x1xf32> to vector<128x128xf32>
    %21 = arith.divf %13, %20 : vector<128x128xf32>
    %22 = arith.cmpf one, %21, %21 : vector<128x128xf32>
    %cst_6 = arith.constant 0.000000e+00 : f32
    %23 = vector.broadcast %cst_6 : f32 to vector<128x128xf32>
    %24 = arith.select %22, %23, %21 : vector<128x128xi1>, vector<128x128xf32>
    %c0_7 = arith.constant 0 : index
    %c0_8 = arith.constant 0 : index
    %25 = vector.load %arg2[%c0_7, %c0_8] : memref<128x128xf32, #tpu.memory_space<vmem>>, vector<128x128xf32>
    tpu.vector_store %arg2[%c0_7, %c0_8], %24 {strides = array<i32>} : memref<128x128xf32, #tpu.memory_space<vmem>>, vector<128x128xf32>,
    return
  }
  func.func @transform_0(%arg0: i32) -> (i32, i32) {
    %c0_i32 = arith.constant 0 : i32
    %c0_i32_0 = arith.constant 0 : i32
    return %arg0, %c0_i32 : i32, i32
  }
  func.func @transform_1(%arg0: i32) -> (i32, i32) {
    %c0_i32 = arith.constant 0 : i32
    %c0_i32_0 = arith.constant 0 : i32
    return %arg0, %c0_i32 : i32, i32
  }
}

module attributes {stable_mosaic.version = 11 : i64} {
  func.func @_fused_prop_tv_kernel(%arg0: i32, %arg1: i32, %arg2: memref<1x128x256xi8, #tpu.memory_space<vmem>>, %arg3: memref<256x128xbf16, #tpu.memory_space<vmem>>, %arg4: memref<1x256x128xbf16, #tpu.memory_space<vmem>>, %arg5: memref<1x128x128xf32, #tpu.memory_space<vmem>>, %arg6: memref<1x1x128xf32, #tpu.memory_space<vmem>>) attributes {dimension_semantics = [#tpu.dimension_semantics<parallel>, #tpu.dimension_semantics<arbitrary>], iteration_bounds = array<i64: 3, 2>, scalar_prefetch = 0 : i64, scratch_operands = 0 : i64, tpu.core_type = #tpu.core_type<tc>, window_params = [{transform_indices = @transform_0, window_bounds = array<i64: 1, 128, 256>}, {pipeline_mode = #tpu.pipeline_mode<synchronous>, transform_indices = @transform_1, window_bounds = array<i64: 256, 128>}, {transform_indices = @transform_2, window_bounds = array<i64: 1, 256, 128>}, {transform_indices = @transform_3, window_bounds = array<i64: 1, 128, 128>}, {transform_indices = @transform_4, window_bounds = array<i64: 1, 1, 128>}]} {
    %c0 = arith.constant 0 : index
    %c0_0 = arith.constant 0 : index
    %c0_1 = arith.constant 0 : index
    %0 = vector.load %arg2[%c0, %c0_0, %c0_1] : memref<1x128x256xi8, #tpu.memory_space<vmem>>, vector<1x128x256xi8>
    %1 = vector.shape_cast %0 : vector<1x128x256xi8> to vector<128x256xi8>
    %2 = arith.sitofp %1 : vector<128x256xi8> to vector<128x256xf32>
    %3 = arith.truncf %2 : vector<128x256xf32> to vector<128x256xbf16>
    %c0_2 = arith.constant 0 : index
    %c0_3 = arith.constant 0 : index
    %4 = vector.load %arg3[%c0_2, %c0_3] : memref<256x128xbf16, #tpu.memory_space<vmem>>, vector<256x128xbf16>
    %cst = arith.constant dense<0.000000e+00> : vector<128x128xf32>
    %5 = tpu.matmul %3, %4, %cst {dimension_numbers = #tpu.dot_dimension_numbers<[1], [0], [0], [1], [0, 0, 1, 1], [], []>} : vector<128x256xbf16>, vector<256x128xbf16>, vector<128x128xf32> -> vector<128x128xf32>
    %6 = vector.shape_cast %5 : vector<128x128xf32> to vector<1x128x128xf32>
    %c0_4 = arith.constant 0 : index
    %c0_5 = arith.constant 0 : index
    %c0_6 = arith.constant 0 : index
    %7 = vector.load %arg5[%c0_4, %c0_5, %c0_6] : memref<1x128x128xf32, #tpu.memory_space<vmem>>, vector<1x128x128xf32>
    tpu.vector_store %arg5[%c0_4, %c0_5, %c0_6], %6 {strides = array<i32>} : memref<1x128x128xf32, #tpu.memory_space<vmem>>, vector<1x128x128xf32>,
    %c0_7 = arith.constant 0 : index
    %c0_8 = arith.constant 0 : index
    %c0_9 = arith.constant 0 : index
    %8 = vector.load %arg4[%c0_7, %c0_8, %c0_9] : memref<1x256x128xbf16, #tpu.memory_space<vmem>>, vector<1x256x128xbf16>
    %9 = vector.shape_cast %8 : vector<1x256x128xbf16> to vector<256x128xbf16>
    %cst_10 = arith.constant dense<0.000000e+00> : vector<128x128xf32>
    %10 = tpu.matmul %3, %9, %cst_10 {dimension_numbers = #tpu.dot_dimension_numbers<[1], [0], [0], [1], [0, 0, 1, 1], [], []>} : vector<128x256xbf16>, vector<256x128xbf16>, vector<128x128xf32> -> vector<128x128xf32>
    %c128_i32 = arith.constant 128 : i32
    %11 = arith.muli %arg1, %c128_i32 : i32
    %12 = tpu.assume_multiple %11, 128 : i32
    %c0_11 = arith.constant 0 : index
    %13 = arith.index_cast %12 : i32 to index
    %c0_12 = arith.constant 0 : index
    %14 = vector.load %arg4[%c0_11, %13, %c0_12] : memref<1x256x128xbf16, #tpu.memory_space<vmem>>, vector<1x128x128xbf16>
    %15 = vector.shape_cast %14 : vector<1x128x128xbf16> to vector<128x128xbf16>
    %16 = arith.extf %15 : vector<128x128xbf16> to vector<128x128xf32>
    %c0_i32 = arith.constant 0 : i32
    %17 = arith.cmpi eq, %arg1, %c0_i32 : i32
    %18 = arith.extui %17 : i1 to i32
    %c0_i32_13 = arith.constant 0 : i32
    %19 = arith.cmpi ne, %18, %c0_i32_13 : i32
    scf.if %19 {
      %cst_21 = arith.constant 0.000000e+00 : f32
      %27 = vector.broadcast %cst_21 : f32 to vector<1x1x128xf32>
      %c0_22 = arith.constant 0 : index
      %c0_23 = arith.constant 0 : index
      %c0_24 = arith.constant 0 : index
      %28 = vector.load %arg6[%c0_22, %c0_23, %c0_24] : memref<1x1x128xf32, #tpu.memory_space<vmem>>, vector<1x1x128xf32>
      tpu.vector_store %arg6[%c0_22, %c0_23, %c0_24], %27 {strides = array<i32>} : memref<1x1x128xf32, #tpu.memory_space<vmem>>, vector<1x1x128xf32>,
    } else {
    }
    %c0_14 = arith.constant 0 : index
    %c0_15 = arith.constant 0 : index
    %c0_16 = arith.constant 0 : index
    %20 = vector.load %arg6[%c0_14, %c0_15, %c0_16] : memref<1x1x128xf32, #tpu.memory_space<vmem>>, vector<1x1x128xf32>
    %21 = arith.mulf %16, %10 : vector<128x128xf32>
    %cst_17 = arith.constant dense<0.000000e+00> : vector<128xf32>
    %22 = vector.multi_reduction <add>, %21, %cst_17 [0] : vector<128x128xf32> to vector<128xf32>
    %23 = vector.shape_cast %22 : vector<128xf32> to vector<1x128xf32>
    %24 = vector.shape_cast %23 : vector<1x128xf32> to vector<1x1x128xf32>
    %25 = arith.addf %20, %24 : vector<1x1x128xf32>
    %c0_18 = arith.constant 0 : index
    %c0_19 = arith.constant 0 : index
    %c0_20 = arith.constant 0 : index
    %26 = vector.load %arg6[%c0_18, %c0_19, %c0_20] : memref<1x1x128xf32, #tpu.memory_space<vmem>>, vector<1x1x128xf32>
    tpu.vector_store %arg6[%c0_18, %c0_19, %c0_20], %25 {strides = array<i32>} : memref<1x1x128xf32, #tpu.memory_space<vmem>>, vector<1x1x128xf32>,
    return
  }
  func.func @transform_0(%arg0: i32, %arg1: i32) -> (i32, i32, i32) {
    %c0_i32 = arith.constant 0 : i32
    %c0_i32_0 = arith.constant 0 : i32
    return %arg0, %arg1, %c0_i32 : i32, i32, i32
  }
  func.func @transform_1(%arg0: i32, %arg1: i32) -> (i32, i32) {
    %c0_i32 = arith.constant 0 : i32
    %c0_i32_0 = arith.constant 0 : i32
    %c0_i32_1 = arith.constant 0 : i32
    return %c0_i32, %c0_i32_0 : i32, i32
  }
  func.func @transform_2(%arg0: i32, %arg1: i32) -> (i32, i32, i32) {
    %c0_i32 = arith.constant 0 : i32
    %c0_i32_0 = arith.constant 0 : i32
    %c0_i32_1 = arith.constant 0 : i32
    return %arg0, %c0_i32, %c0_i32_0 : i32, i32, i32
  }
  func.func @transform_3(%arg0: i32, %arg1: i32) -> (i32, i32, i32) {
    %c0_i32 = arith.constant 0 : i32
    %c0_i32_0 = arith.constant 0 : i32
    return %arg0, %arg1, %c0_i32 : i32, i32, i32
  }
  func.func @transform_4(%arg0: i32, %arg1: i32) -> (i32, i32, i32) {
    %c0_i32 = arith.constant 0 : i32
    %c0_i32_0 = arith.constant 0 : i32
    %c0_i32_1 = arith.constant 0 : i32
    return %arg0, %c0_i32, %c0_i32_0 : i32, i32, i32
  }
}

module attributes {stable_mosaic.version = 11 : i64} {
  func.func @_pairnorm_linear_kernel(%arg0: memref<256x128xf32, #tpu.memory_space<vmem>>, %arg1: memref<128x128xf32, #tpu.memory_space<vmem>>, %arg2: memref<1x128xf32, #tpu.memory_space<vmem>>, %arg3: memref<256x128xf32, #tpu.memory_space<vmem>>) attributes {dimension_semantics = [], scalar_prefetch = 0 : i64, scratch_operands = 0 : i64, tpu.core_type = #tpu.core_type<tc>} {
    %c0 = arith.constant 0 : index
    %c0_0 = arith.constant 0 : index
    %0 = vector.load %arg0[%c0, %c0_0] : memref<256x128xf32, #tpu.memory_space<vmem>>, vector<256x128xf32>
    %1 = tpu.iota {dimensions = array<i32: 0>} : vector<256x128xi32>
    %c192_i32 = arith.constant 192 : i32
    %2 = vector.broadcast %c192_i32 : i32 to vector<256x128xi32>
    %3 = arith.cmpi slt, %1, %2 : vector<256x128xi32>
    %cst = arith.constant 0.000000e+00 : f32
    %4 = vector.broadcast %cst : f32 to vector<256x128xf32>
    %5 = arith.select %3, %0, %4 : vector<256x128xi1>, vector<256x128xf32>
    %cst_1 = arith.constant dense<0.000000e+00> : vector<128xf32>
    %6 = vector.multi_reduction <add>, %5, %cst_1 [0] : vector<256x128xf32> to vector<128xf32>
    %7 = vector.shape_cast %6 : vector<128xf32> to vector<1x128xf32>
    %cst_2 = arith.constant 1.920000e+02 : f32
    %8 = vector.broadcast %cst_2 : f32 to vector<1x128xf32>
    %9 = arith.divf %7, %8 : vector<1x128xf32>
    %10 = vector.broadcast %9 : vector<1x128xf32> to vector<256x128xf32>
    %11 = arith.subf %0, %10 : vector<256x128xf32>
    %cst_3 = arith.constant 0.000000e+00 : f32
    %12 = vector.broadcast %cst_3 : f32 to vector<256x128xf32>
    %13 = arith.select %3, %11, %12 : vector<256x128xi1>, vector<256x128xf32>
    %14 = arith.mulf %13, %13 : vector<256x128xf32>
    %15 = vector.shape_cast %14 : vector<256x128xf32> to vector<1x256x128xf32>
    %cst_4 = arith.constant dense<0.000000e+00> : vector<1xf32>
    %16 = vector.multi_reduction <add>, %15, %cst_4 [1, 2] : vector<1x256x128xf32> to vector<1xf32>
    %17 = vector.shape_cast %16 : vector<1xf32> to vector<1x1x1xf32>
    %18 = vector.extract %17[0, 0, 0] : f32 from vector<1x1x1xf32>
    %cst_5 = arith.constant 1.920000e+02 : f32
    %19 = arith.divf %18, %cst_5 : f32
    %cst_6 = arith.constant 9.99999997E-7 : f32
    %20 = arith.addf %cst_6, %19 : f32
    %21 = math.sqrt %20 : f32
    %cst_7 = arith.constant 1.000000e+00 : f32
    %22 = arith.divf %cst_7, %21 : f32
    %23 = vector.broadcast %22 : f32 to vector<256x128xf32>
    %24 = arith.mulf %23, %13 : vector<256x128xf32>
    %c0_8 = arith.constant 0 : index
    %c0_9 = arith.constant 0 : index
    %25 = vector.load %arg1[%c0_8, %c0_9] : memref<128x128xf32, #tpu.memory_space<vmem>>, vector<128x128xf32>
    %cst_10 = arith.constant dense<0.000000e+00> : vector<256x128xf32>
    %26 = tpu.matmul %24, %25, %cst_10 {dimension_numbers = #tpu.dot_dimension_numbers<[1], [0], [0], [1], [0, 0, 1, 1], [], []>} : vector<256x128xf32>, vector<128x128xf32>, vector<256x128xf32> -> vector<256x128xf32>
    %c0_11 = arith.constant 0 : index
    %c0_12 = arith.constant 0 : index
    %27 = vector.load %arg2[%c0_11, %c0_12] : memref<1x128xf32, #tpu.memory_space<vmem>>, vector<1x128xf32>
    %28 = vector.broadcast %27 : vector<1x128xf32> to vector<256x128xf32>
    %29 = arith.addf %26, %28 : vector<256x128xf32>
    %c0_13 = arith.constant 0 : index
    %c0_14 = arith.constant 0 : index
    %30 = vector.load %arg3[%c0_13, %c0_14] : memref<256x128xf32, #tpu.memory_space<vmem>>, vector<256x128xf32>
    tpu.vector_store %arg3[%c0_13, %c0_14], %29 {strides = array<i32>} : memref<256x128xf32, #tpu.memory_space<vmem>>, vector<256x128xf32>,
    return
  }
}

</mosaic_0001>

<bundles_post_ra>
// kernel: forward.7
= control target key start
LH: loop header
LB: loop body
LE: loop exit
PB: predicated region body
PF: predicated region fallthrough
CT: control target
= control target key end

     0   :  { %6 = vsyncpa [#allocation3], 0  ;;  %s1253_s0 = inlined_call_operand.vmem [shape: f32[256,128], index: 0, kind: input, shape index: {}]   ;;  %s1254_s1 = inlined_call_operand.hbm [shape: f32[256,128], index: 1, kind: output, shape index: {}]  }
   0x1   :  { %8 = vsyncpa [#allocation3 + $0x1], 0  ;;  %s762_s6 = smov 0   ;;  %s764_s7 = smov 0  }
   0x2   :  { %s766_s8 = smov 0   ;;  %s768_s9 = smov 0  }
   0x3 LB: > { %s783_s10 = sadd.s32 4294967295, %s747_s9   ;;  %s567_s11 = sadd.s32 4294967294, %s747_s9   ;;  %s747_s9 = sphi %s768_s9, %s1260_s9   ;;  %s743_s8 = sphi %s766_s8, %s1259_s8   ;;  %s739_s7 = sphi %s764_s7, %s1258_s7   ;;  %s735_s6 = sphi %s762_s6, %s1257_s6  }
   0x4   : > { %s787_s12 = sadd.s32 1, %s747_s9   ;;  %s47_s13 = sadd.s32 1, %s743_s8 }
   0x5   : > { %s44_s14 = ssub.s32 %s747_s9, %s787_s12  ;;  %p57_p0 = scmp.ne.s32.totalorder %s743_s8, %s739_s7 }
   0x6   : > { %p45_p1 = scmp.eq.s32.totalorder %s44_s14, 0  ;;  %p58_p2 = scmp.eq.s32.totalorder %s783_s10, 1 }
   0x7   : > { %p63_p3 = scmp.ne.s32.totalorder %s739_s7, %s735_s6  ;;  %p64_p4 = scmp.eq.s32.totalorder %s567_s11, 1 }
   0x8   : > { %s798_s15 = scalar_select %p45_p1, %s743_s8, %s47_s13  }
   0x9   : > { %p800_p5 = por %p58_p2, %p57_p0  ;;  %p804_p6 = por %p64_p4, %p63_p3 }
   0xa   : > { %p570_p7 = scmp.ge.s32.totalorder %s747_s9, 1  ;;  %p91_p8 = scmp.lt.s32.totalorder %s747_s9, 3 }
   0xc   : > { %p92_p9 = pnand %p570_p7, %p91_p8 }
   0xd   : > { %s572_s18 = sshll.u32 (!%p92_p9), %s783_s10, 4  ;;  %v134_v0 = vlaneseq (!%p92_p9)  ;;  %s108_s23 = sand.u32 (!%p92_p9), 1, %s739_s7  }
   0xe   : > { %95 = sbr.rel (%p92_p9) target bundleno = 403 (0x193), region = 24  ;;  %p112_p10 = scmp.lt.s32.totalorder (!%p92_p9), %s572_s18, 31 }
   0xf   : > { %v811_v1 = vand.u32 (!%p92_p9), 127, %v134_v0  ;;  %s1077_s24 = sshll.u32 (!%p92_p9), %s108_s23, 7  ;;  %s579_s26 = sshll.u32 (!%p92_p9), %s783_s10, 11 }
  0x10   : > { %s1110_s25 = scalar_lea.vmem (!%p92_p9), [#allocation2], %s1077_s24  ;;  %s1205_s30 = scalar_lea.hbm (!%p92_p9), %s1254_s1, %s579_s26 }
  0x11   : > { %vm136_vm0 = vcmp.lt.s32.totalorder (!%p92_p9), %v811_v1, 16  ;;  %s505_s27 = sshll.u32 (!%p92_p9), %s1110_s25, 4  ;;  %s1212_s2 = scalar_lea.sflag (!%p92_p9), [#allocation3], %s108_s23  ;;  %s1207_s27 = int_to_ptr.vmem [resolvable:$true] %s505_s27 }
  0x12   : > { %s685_s3 = scalar_lea.vmem (!%p92_p9), %s1207_s27, 2048  ;;  %s749_s4 = smov (!%p92_p9), [#allocation2]  }
  0x13   : > { %p686_p11 = scmp.ne.s32.totalorder (!%p92_p9), %s1207_s27, %s685_s3  ;;  %s689_s5 = sshll.u32 (!%p92_p9), %s749_s4, 4  ;;  %s690_s5 = int_to_ptr.vmem [resolvable:$false] %s689_s5 }
  0x14   : > { %s691_s10 = scalar_lea.vmem (!%p92_p9), %s690_s5, 4096  ;;  %p692_p0 = scmp.lt.s32.totalorder (!%p92_p9), %s1207_s27, %s690_s5 }
  0x15   : > { %s1262_s18 = smov (!%p112_p10, %s572_s18), 31  ;;  %p687_p12 = pnand %p686_p11, %p800_p5 }
  0x16   : > { %s573_s19 = sshll.u32 %s1262_s18, 3  ;;  %p693_p1 = scmp.lt.s32.totalorder %s691_s10, %s685_s3 }
  0x17   : > { %s817_s22 = scalar_lea.vmem %s1253_s0, %s573_s19  ;;  %p688_p13 = pneg %p687_p12 }
  0x18   : > { %v118_v2 = vld [vmem:[%s817_s22] sm:$0xff]  ;;  %v120_v3 = vld [vmem:[%s817_s22 + $0x10] sm:$0xff]  ;;  %v822_v4 = vld [vmem:[%s817_s22 + $0x8] sm:$0xff]  ;;  %p694_p2 = por %p693_p1, %p692_p0 }
  0x19   : > { %v137_v5 = vsel %vm136_vm0, %v118_v2, 0.0  ;;  %v139_v6 = vsel %vm136_vm0, %v120_v3, 0.0  ;;  %v829_v7 = vld [vmem:[%s817_s22 + $0x18] sm:$0xff]  ;;  %v138_v8 = vsel %vm136_vm0, %v822_v4, 0.0  ;;  %v838_v10 = vld [vmem:[%s817_s22 + $0x20] sm:$0xff]  ;;  %v841_v11 = vld [vmem:[%s817_s22 + $0x28] sm:$0xff] }
  0x1a   : > { %153 = vadd.xlane.f32.xlu0 %v137_v5  ;;  %157 = vadd.xlane.f32.xlu1 %v139_v6  ;;  %v140_v9 = vsel %vm136_vm0, %v829_v7, 0.0  ;;  %v141_v12 = vsel %vm136_vm0, %v838_v10, 0.0  ;;  %v142_v13 = vsel %vm136_vm0, %v841_v11, 0.0  ;;  %v850_v14 = vld [vmem:[%s817_s22 + $0x30] sm:$0xff]  ;;  %v853_v15 = vld [vmem:[%s817_s22 + $0x38] sm:$0xff]  ;;  %v862_v18 = vld [vmem:[%s817_s22 + $0x40] sm:$0xff]  ;;  %p695_p3 = pnand %p694_p2, %p688_p13 }
  0x1b   : > { %v143_v16 = vsel %vm136_vm0, %v850_v14, 0.0  ;;  %v144_v17 = vsel %vm136_vm0, %v853_v15, 0.0  ;;  %v865_v19 = vld [vmem:[%s817_s22 + $0x48] sm:$0xff]  ;;  %v145_v20 = vsel %vm136_vm0, %v862_v18, 0.0  ;;  %v874_v22 = vld [vmem:[%s817_s22 + $0x50] sm:$0xff]  ;;  %v877_v23 = vld [vmem:[%s817_s22 + $0x58] sm:$0xff] }
  0x1c   : > { %v146_v21 = vsel %vm136_vm0, %v865_v19, 0.0  ;;  %v147_v24 = vsel %vm136_vm0, %v874_v22, 0.0  ;;  %v148_v25 = vsel %vm136_vm0, %v877_v23, 0.0  ;;  %v886_v26 = vld [vmem:[%s817_s22 + $0x60] sm:$0xff]  ;;  %v889_v27 = vld [vmem:[%s817_s22 + $0x68] sm:$0xff]  ;;  %v898_v30 = vld [vmem:[%s817_s22 + $0x70] sm:$0xff] }
  0x1d   : > { %v149_v28 = vsel %vm136_vm0, %v886_v26, 0.0  ;;  %v150_v29 = vsel %vm136_vm0, %v889_v27, 0.0  ;;  %v901_v31 = vld [vmem:[%s817_s22 + $0x78] sm:$0xff]  ;;  %v151_v32 = vsel %vm136_vm0, %v898_v30, 0.0 }
  0x1e   : > { %155 = vadd.xlane.f32.xlu0 %v138_v8  ;;  %159 = vadd.xlane.f32.xlu1 %v140_v9  ;;  %v152_v33 = vsel %vm136_vm0, %v901_v31, 0.0 }
  0x22   : > { %161 = vadd.xlane.f32.xlu0 %v141_v12  ;;  %163 = vadd.xlane.f32.xlu1 %v142_v13 }
  0x26   : > { %165 = vadd.xlane.f32.xlu0 %v143_v16  ;;  %167 = vadd.xlane.f32.xlu1 %v144_v17 }
  0x2a   : > { %169 = vadd.xlane.f32.xlu0 %v145_v20  ;;  %171 = vadd.xlane.f32.xlu1 %v146_v21 }
  0x2e   : > { %173 = vadd.xlane.f32.xlu0 %v147_v24  ;;  %175 = vadd.xlane.f32.xlu1 %v148_v25 }
  0x32   : > { %177 = vadd.xlane.f32.xlu0 %v149_v28  ;;  %179 = vadd.xlane.f32.xlu1 %v150_v29 }
  0x36   : > { %181 = vadd.xlane.f32.xlu0 %v151_v32  ;;  %183 = vadd.xlane.f32.xlu1 %v152_v33 }
  0xa7   : > { %v154_v34 = vpop.xlane.xlu0 %153  ;;  %v158_v35 = vpop.xlane.xlu1 %157 }
  0xa8   : > { %v186_v36 = vmul.f32 0.0625, %v154_v34  ;;  %v188_v37 = vmul.f32 0.0625, %v158_v35 }
  0xaa   : > { %v202_v38 = vsub.f32 %v118_v2, %v186_v36  ;;  %v204_v39 = vsub.f32 %v120_v3, %v188_v37 }
  0xab   : > { %v156_v40 = vpop.xlane.xlu0 %155  ;;  %v160_v41 = vpop.xlane.xlu1 %159 }
  0xac   : > { %v187_v42 = vmul.f32 0.0625, %v156_v40  ;;  %v189_v43 = vmul.f32 0.0625, %v160_v41  ;;  %v911_v44 = vsel %vm136_vm0, %v202_v38, 0.0  ;;  %v915_v45 = vsel %vm136_vm0, %v204_v39, 0.0 }
  0xad   : > { %v234_v46 = vmul.f32 %v911_v44, %v911_v44  ;;  %v236_v51 = vmul.f32 %v915_v45, %v915_v45 }
  0xae   : > { %v203_v47 = vsub.f32 %v822_v4, %v187_v42  ;;  %v205_v48 = vsub.f32 %v829_v7, %v189_v43 }
  0xaf   : > { %250 = vadd.xlane.f32.xlu0 %v234_v46  ;;  %v162_v49 = vpop.xlane.xlu0 %161  ;;  %v164_v50 = vpop.xlane.xlu1 %163 }
  0xb0   : > { %v190_v52 = vmul.f32 0.0625, %v162_v49  ;;  %v191_v53 = vmul.f32 0.0625, %v164_v50  ;;  %v925_v54 = vsel %vm136_vm0, %v203_v47, 0.0  ;;  %v929_v55 = vsel %vm136_vm0, %v205_v48, 0.0 }
  0xb1   : > { %v235_v56 = vmul.f32 %v925_v54, %v925_v54  ;;  %v237_v61 = vmul.f32 %v929_v55, %v929_v55 }
  0xb2   : > { %v206_v57 = vsub.f32 %v838_v10, %v190_v52  ;;  %v207_v58 = vsub.f32 %v841_v11, %v191_v53 }
  0xb3   : > { %254 = vadd.xlane.f32.xlu0 %v236_v51  ;;  %252 = vadd.xlane.f32.xlu1 %v235_v56  ;;  %v166_v59 = vpop.xlane.xlu0 %165  ;;  %v168_v60 = vpop.xlane.xlu1 %167 }
  0xb4   : > { %v192_v62 = vmul.f32 0.0625, %v166_v59  ;;  %v193_v63 = vmul.f32 0.0625, %v168_v60  ;;  %v939_v0 = vsel %vm136_vm0, %v206_v57, 0.0  ;;  %v943_v2 = vsel %vm136_vm0, %v207_v58, 0.0 }
  0xb5   : > { %v238_v3 = vmul.f32 %v939_v0, %v939_v0  ;;  %v239_v8 = vmul.f32 %v943_v2, %v943_v2 }
  0xb6   : > { %v208_v4 = vsub.f32 %v850_v14, %v192_v62  ;;  %v209_v5 = vsub.f32 %v853_v15, %v193_v63 }
  0xb7   : > { %256 = vadd.xlane.f32.xlu1 %v237_v61  ;;  %258 = vadd.xlane.f32.xlu0 %v238_v3  ;;  %v170_v6 = vpop.xlane.xlu0 %169  ;;  %v172_v7 = vpop.xlane.xlu1 %171 }
  0xb8   : > { %v194_v9 = vmul.f32 0.0625, %v170_v6  ;;  %v195_v10 = vmul.f32 0.0625, %v172_v7  ;;  %v953_v11 = vsel %vm136_vm0, %v208_v4, 0.0  ;;  %v957_v12 = vsel %vm136_vm0, %v209_v5, 0.0 }
  0xb9   : > { %v240_v13 = vmul.f32 %v953_v11, %v953_v11  ;;  %v241_v20 = vmul.f32 %v957_v12, %v957_v12 }
  0xba   : > { %v210_v14 = vsub.f32 %v862_v18, %v194_v9  ;;  %v211_v15 = vsub.f32 %v865_v19, %v195_v10 }
  0xbb   : > { %260 = vadd.xlane.f32.xlu1 %v239_v8  ;;  %262 = vadd.xlane.f32.xlu0 %v240_v13  ;;  %v174_v16 = vpop.xlane.xlu0 %173  ;;  %v176_v17 = vpop.xlane.xlu1 %175 }
  0xbc   : > { %v196_v21 = vmul.f32 0.0625, %v174_v16  ;;  %v197_v24 = vmul.f32 0.0625, %v176_v17  ;;  %v967_v25 = vsel %vm136_vm0, %v210_v14, 0.0  ;;  %v971_v28 = vsel %vm136_vm0, %v211_v15, 0.0 }
  0xbd   : > { %v242_v18 = vmul.f32 %v967_v25, %v967_v25  ;;  %v243_v34 = vmul.f32 %v971_v28, %v971_v28 }
  0xbe   : > { %v212_v19 = vsub.f32 %v874_v22, %v196_v21  ;;  %v213_v29 = vsub.f32 %v877_v23, %v197_v24 }
  0xbf   : > { %264 = vadd.xlane.f32.xlu1 %v241_v20  ;;  %266 = vadd.xlane.f32.xlu0 %v242_v18  ;;  %v178_v32 = vpop.xlane.xlu0 %177  ;;  %v180_v33 = vpop.xlane.xlu1 %179 }
  0xc0   : > { %v198_v35 = vmul.f32 0.0625, %v178_v32  ;;  %v199_v36 = vmul.f32 0.0625, %v180_v33  ;;  %v981_v37 = vsel %vm136_vm0, %v212_v19, 0.0  ;;  %v985_v38 = vsel %vm136_vm0, %v213_v29, 0.0 }
  0xc1   : > { %v244_v22 = vmul.f32 %v981_v37, %v981_v37  ;;  %v245_v42 = vmul.f32 %v985_v38, %v985_v38 }
  0xc2   : > { %v214_v23 = vsub.f32 %v886_v26, %v198_v35  ;;  %v215_v39 = vsub.f32 %v889_v27, %v199_v36 }
  0xc3   : > { %268 = vadd.xlane.f32.xlu1 %v243_v34  ;;  %270 = vadd.xlane.f32.xlu0 %v244_v22  ;;  %v182_v40 = vpop.xlane.xlu0 %181  ;;  %v184_v41 = vpop.xlane.xlu1 %183 }
  0xc4   : > { %v200_v43 = vmul.f32 0.0625, %v182_v40  ;;  %v201_v46 = vmul.f32 0.0625, %v184_v41  ;;  %v995_v47 = vsel %vm136_vm0, %v214_v23, 0.0  ;;  %v999_v48 = vsel %vm136_vm0, %v215_v39, 0.0 }
  0xc5   : > { %v246_v26 = vmul.f32 %v995_v47, %v995_v47  ;;  %v247_v50 = vmul.f32 %v999_v48, %v999_v48 }
  0xc6   : > { %v216_v27 = vsub.f32 %v898_v30, %v200_v43  ;;  %v217_v49 = vsub.f32 %v901_v31, %v201_v46 }
  0xc7   : > { %272 = vadd.xlane.f32.xlu1 %v245_v42  ;;  %274 = vadd.xlane.f32.xlu0 %v246_v26 }
  0xc8   : > { %v1009_v51 = vsel %vm136_vm0, %v216_v27, 0.0  ;;  %v1013_v52 = vsel %vm136_vm0, %v217_v49, 0.0 }
  0xc9   : > { %v248_v53 = vmul.f32 %v1009_v51, %v1009_v51  ;;  %v249_v30 = vmul.f32 %v1013_v52, %v1013_v52 }
  0xcb   : > { %276 = vadd.xlane.f32.xlu1 %v247_v50  ;;  %278 = vadd.xlane.f32.xlu0 %v248_v53 }
  0xcf   : > { %280 = vadd.xlane.f32.xlu1 %v249_v30 }
 0x13c   : > { %v251_v31 = vpop.xlane.xlu0 %250 }
 0x13d   : > { %v283_v56 = vmul.f32 0.06666667, %v251_v31 }
 0x13f   : > { %621 = vrsqrt.f32 %v283_v56  ;;  %vm301_vm1 = vcmp.eq.f32.partialorder %v283_v56, inf  ;;  %vm303_vm2 = vcmp.eq.f32.partialorder %v283_v56, 0.0  ;;  %v304_v9 = vand.u32 2147483648, %v283_v56 }
 0x140   : > { %v253_v57 = vpop.xlane.xlu1 %252  ;;  %v255_v58 = vpop.xlane.xlu0 %254 }
 0x141   : > { %v284_v59 = vmul.f32 0.06666667, %v253_v57  ;;  %v285_v60 = vmul.f32 0.06666667, %v255_v58 }
 0x143   : > { %623 = vrsqrt.f32 %v284_v59  ;;  %vm308_vm3 = vcmp.eq.f32.partialorder %v284_v59, inf  ;;  %vm310_vm4 = vcmp.eq.f32.partialorder %v284_v59, 0.0  ;;  %v311_v10 = vand.u32 2147483648, %v284_v59 }
 0x144   : > { %625 = vrsqrt.f32 %v285_v60  ;;  %v257_v1 = vpop.xlane.xlu1 %256  ;;  %v259_v61 = vpop.xlane.xlu0 %258  ;;  %vm315_vm5 = vcmp.eq.f32.partialorder %v285_v60, inf  ;;  %vm317_vm6 = vcmp.eq.f32.partialorder %v285_v60, 0.0  ;;  %v318_v14 = vand.u32 2147483648, %v285_v60 }
 0x145   : > { %v1019_v62 = vmul.f32 0.06666667, %v257_v1  ;;  %v1021_v63 = vmul.f32 0.06666667, %v259_v61 }
 0x147   : > { %627 = vrsqrt.f32 %v1019_v62  ;;  %vm322_vm7 = vcmp.eq.f32.partialorder %v1019_v62, inf  ;;  %vm324_vm8 = vcmp.eq.f32.partialorder %v1019_v62, 0.0  ;;  %v325_v29 = vand.u32 2147483648, %v1019_v62 }
 0x148   : > { %629 = vrsqrt.f32 %v1021_v63  ;;  %v261_v3 = vpop.xlane.xlu1 %260  ;;  %v263_v4 = vpop.xlane.xlu0 %262  ;;  %vm329_vm9 = vcmp.eq.f32.partialorder %v1021_v63, inf  ;;  %vm331_vm10 = vcmp.eq.f32.partialorder %v1021_v63, 0.0  ;;  %v332_v34 = vand.u32 2147483648, %v1021_v63 }
 0x149   : > { %v622_v5 = vpop.eup %621  ;;  %v1025_v6 = vmul.f32 0.06666667, %v261_v3  ;;  %v1027_v7 = vmul.f32 0.06666667, %v263_v4 }
 0x14a   : > { %v300_v8 = vmul.f32 %v622_v5, %v283_v56 }
 0x14b   : > { %631 = vrsqrt.f32 %v1025_v6  ;;  %vm336_vm11 = vcmp.eq.f32.partialorder %v1025_v6, inf  ;;  %vm338_vm12 = vcmp.eq.f32.partialorder %v1025_v6, 0.0  ;;  %v339_v40 = vand.u32 2147483648, %v1025_v6 }
 0x14c   : > { %v302_v13 = vsel %vm301_vm1, %v283_v56, %v300_v8  ;;  %633 = vrsqrt.f32 %v1027_v7  ;;  %v265_v15 = vpop.xlane.xlu1 %264  ;;  %v267_v16 = vpop.xlane.xlu0 %266  ;;  %vm343_vm13 = vcmp.eq.f32.partialorder %v1027_v7, inf  ;;  %vm345_vm14 = vcmp.eq.f32.partialorder %v1027_v7, 0.0 }
 0x14d   : > { %v624_v17 = vpop.eup %623  ;;  %v305_v20 = vsel %vm303_vm2, %v304_v9, %v302_v13  ;;  %v1032_v21 = vmul.f32 0.06666667, %v265_v15  ;;  %v1034_v24 = vmul.f32 0.06666667, %v267_v16  ;;  %v346_v50 = vand.u32 2147483648, %v1027_v7 }
 0x14e   : > { %v626_v18 = vpop.eup %625  ;;  %635 = vrcp.f32 %v305_v20  ;;  %v307_v19 = vmul.f32 %v624_v17, %v284_v59 }
 0x14f   : > { %v314_v32 = vmul.f32 %v626_v18, %v285_v60  ;;  %637 = vrsqrt.f32 %v1032_v21  ;;  %vm350_vm15 = vcmp.eq.f32.partialorder %v1032_v21, inf  ;;  %vm352_vm0 = vcmp.eq.f32.partialorder %v1032_v21, 0.0 }
 0x150   : > { %v309_v33 = vsel %vm308_vm3, %v284_v59, %v307_v19  ;;  %639 = vrsqrt.f32 %v1034_v24  ;;  %v269_v35 = vpop.xlane.xlu1 %268  ;;  %v271_v36 = vpop.xlane.xlu0 %270  ;;  %v353_v61 = vand.u32 2147483648, %v1032_v21  ;;  %vm357_vm1 = vcmp.eq.f32.partialorder %v1034_v24, inf }
 0x151   : > { %v628_v22 = vpop.eup %627  ;;  %v312_v23 = vsel %vm310_vm4, %v311_v10, %v309_v33  ;;  %v316_v39 = vsel %vm315_vm5, %v285_v60, %v314_v32  ;;  %v1051_v46 = vmul.f32 0.06666667, %v269_v35  ;;  %v1055_v27 = vmul.f32 0.06666667, %v271_v36 }
 0x152   : > { %v630_v41 = vpop.eup %629  ;;  %641 = vrcp.f32 %v312_v23  ;;  %v319_v42 = vsel %vm317_vm6, %v318_v14, %v316_v39  ;;  %v321_v43 = vmul.f32 %v628_v22, %v1019_v62  ;;  %vm359_vm2 = vcmp.eq.f32.partialorder %v1034_v24, 0.0 }
 0x153   : > { %643 = vrcp.f32 %v319_v42  ;;  %v328_v26 = vmul.f32 %v630_v41, %v1021_v63  ;;  %v360_v3 = vand.u32 2147483648, %v1034_v24  ;;  %vm364_vm3 = vcmp.eq.f32.partialorder %v1051_v46, inf }
 0x154   : > { %v323_v49 = vsel %vm322_vm7, %v1019_v62, %v321_v43  ;;  %645 = vrsqrt.f32 %v1051_v46  ;;  %v273_v53 = vpop.xlane.xlu1 %272  ;;  %v275_v60 = vpop.xlane.xlu0 %274  ;;  %vm366_vm5 = vcmp.eq.f32.partialorder %v1051_v46, 0.0  ;;  %v367_v22 = vand.u32 2147483648, %v1051_v46 }
 0x155   : > { %v632_v30 = vpop.eup %631  ;;  %v326_v31 = vsel %vm324_vm8, %v325_v29, %v323_v49  ;;  %v330_v56 = vsel %vm329_vm9, %v1021_v63, %v328_v26  ;;  %647 = vrsqrt.f32 %v1055_v27  ;;  %v1087_v4 = vmul.f32 0.06666667, %v273_v53 }
 0x156   : > { %v634_v57 = vpop.eup %633  ;;  %649 = vrcp.f32 %v326_v31  ;;  %v333_v58 = vsel %vm331_vm10, %v332_v34, %v330_v56  ;;  %v335_v59 = vmul.f32 %v632_v30, %v1025_v6  ;;  %v1095_v13 = vmul.f32 0.06666667, %v275_v60 }
 0x157   : > { %651 = vrcp.f32 %v333_v58  ;;  %v342_v1 = vmul.f32 %v634_v57, %v1027_v7  ;;  %vm371_vm7 = vcmp.eq.f32.partialorder %v1055_v27, inf  ;;  %vm373_vm9 = vcmp.eq.f32.partialorder %v1055_v27, 0.0 }
 0x158   : > { %v636_v62 = vpop.eup %635  ;;  %v337_v63 = vsel %vm336_vm11, %v1025_v6, %v335_v59  ;;  %v277_v14 = vpop.xlane.xlu1 %276  ;;  %v381_v60 = vand.u32 2147483648, %v1087_v4 }
 0x159   : > { %v638_v5 = vpop.eup %637  ;;  %v412_v8 = vmul.f32 %v636_v62, %v911_v44  ;;  %v340_v9 = vsel %vm338_vm12, %v339_v40, %v337_v63  ;;  %v344_v10 = vsel %vm343_vm13, %v1027_v7, %v342_v1  ;;  %v1107_v7 = vmul.f32 0.06666667, %v277_v14  ;;  %v279_v53 = vpop.xlane.xlu0 %278 }
 0x15a   : > { %v640_v15 = vpop.eup %639  ;;  %653 = vrcp.f32 %v340_v9  ;;  %v347_v16 = vsel %vm345_vm14, %v346_v50, %v344_v10  ;;  %v349_v17 = vmul.f32 %v638_v5, %v1032_v21  ;;  %vm378_vm12 = vcmp.eq.f32.partialorder %v1087_v4, inf }
 0x15b   : > { %vm443_vm4 = vcmp.ne.f32.partialorder %v412_v8, %v412_v8  ;;  %655 = vrcp.f32 %v347_v16  ;;  %v356_v44 = vmul.f32 %v640_v15, %v1034_v24  ;;  %v1143_v58 = vmul.f32 0.06666667, %v279_v53 }
 0x15c   : > { %v642_v6 = vpop.eup %641  ;;  %v459_v20 = vsel %vm443_vm4, 0.0, %v412_v8  ;;  %v351_v18 = vsel %vm350_vm15, %v1032_v21, %v349_v17  ;;  %657 = vrsqrt.f32 %v1087_v4  ;;  %v281_v30 = vpop.xlane.xlu1 %280  ;;  %vm380_vm13 = vcmp.eq.f32.partialorder %v1087_v4, 0.0 }
 0x15d   : > { %v644_v19 = vpop.eup %643  ;;  %475 = vst [vmem:[%s1110_s25] sm:$0xff] %v459_v20  ;;  %v414_v29 = vmul.f32 %v642_v6, %v925_v54  ;;  %v354_v32 = vsel %vm352_vm0, %v353_v61, %v351_v18  ;;  %v358_v33 = vsel %vm357_vm1, %v1034_v24, %v356_v44  ;;  %659 = vrsqrt.f32 %v1095_v13 }
 0x15e   : > { %v646_v34 = vpop.eup %645  ;;  %v416_v35 = vmul.f32 %v644_v19, %v915_v45  ;;  %661 = vrcp.f32 %v354_v32  ;;  %v361_v36 = vsel %vm359_vm2, %v360_v3, %v358_v33  ;;  %v374_v45 = vand.u32 2147483648, %v1055_v27 }
 0x15f   : > { %v648_v54 = vpop.eup %647  ;;  %vm444_vm6 = vcmp.ne.f32.partialorder %v414_v29, %v414_v29  ;;  %663 = vrcp.f32 %v361_v36  ;;  %v363_v21 = vmul.f32 %v646_v34, %v1051_v46  ;;  %v1149_v1 = vmul.f32 0.06666667, %v281_v30 }
 0x160   : > { %v650_v23 = vpop.eup %649  ;;  %v460_v39 = vsel %vm444_vm6, 0.0, %v414_v29  ;;  %vm445_vm8 = vcmp.ne.f32.partialorder %v416_v35, %v416_v35  ;;  %v370_v40 = vmul.f32 %v648_v54, %v1055_v27  ;;  %665 = vrsqrt.f32 %v1107_v7 }
 0x161   : > { %v652_v41 = vpop.eup %651  ;;  %476 = vst [vmem:[%s1110_s25 + $0x8] sm:$0xff] %v460_v39  ;;  %v461_v24 = vsel %vm445_vm8, 0.0, %v416_v35  ;;  %v418_v42 = vmul.f32 %v650_v23, %v929_v55  ;;  %v365_v43 = vsel %vm364_vm3, %v1051_v46, %v363_v21  ;;  %vm385_vm15 = vcmp.eq.f32.partialorder %v1095_v13, inf }
 0x162   : > { %477 = vst [vmem:[%s1110_s25 + $0x10] sm:$0xff] %v461_v24  ;;  %v420_v26 = vmul.f32 %v652_v41, %v939_v0  ;;  %v368_v49 = vsel %vm366_vm5, %v367_v22, %v365_v43  ;;  %v372_v50 = vsel %vm371_vm7, %v1055_v27, %v370_v40  ;;  %vm387_vm1 = vcmp.eq.f32.partialorder %v1095_v13, 0.0 }
 0x163   : > { %vm446_vm10 = vcmp.ne.f32.partialorder %v418_v42, %v418_v42  ;;  %667 = vrcp.f32 %v368_v49  ;;  %v375_v55 = vsel %vm373_vm9, %v374_v45, %v372_v50  ;;  %v388_v10 = vand.u32 2147483648, %v1095_v13 }
 0x164   : > { %v654_v31 = vpop.eup %653  ;;  %v462_v56 = vsel %vm446_vm10, 0.0, %v418_v42  ;;  %vm447_vm11 = vcmp.ne.f32.partialorder %v420_v26, %v420_v26  ;;  %669 = vrcp.f32 %v375_v55  ;;  %vm392_vm4 = vcmp.eq.f32.partialorder %v1107_v7, inf }
 0x165   : > { %v656_v57 = vpop.eup %655  ;;  %478 = vst [vmem:[%s1110_s25 + $0x18] sm:$0xff] %v462_v56  ;;  %v463_v0 = vsel %vm447_vm11, 0.0, %v420_v26  ;;  %v422_v46 = vmul.f32 %v654_v31, %v943_v2  ;;  %671 = vrsqrt.f32 %v1143_v58  ;;  %vm394_vm5 = vcmp.eq.f32.partialorder %v1107_v7, 0.0 }
 0x166   : > { %v658_v27 = vpop.eup %657  ;;  %479 = vst [vmem:[%s1110_s25 + $0x20] sm:$0xff] %v463_v0  ;;  %v424_v59 = vmul.f32 %v656_v57, %v953_v11  ;;  %673 = vrsqrt.f32 %v1149_v1  ;;  %vm399_vm8 = vcmp.eq.f32.partialorder %v1143_v58, inf  ;;  %vm401_vm9 = vcmp.eq.f32.partialorder %v1143_v58, 0.0 }
 0x167   : > { %v660_v61 = vpop.eup %659  ;;  %vm448_vm14 = vcmp.ne.f32.partialorder %v422_v46, %v422_v46  ;;  %v377_v2 = vmul.f32 %v658_v27, %v1087_v4  ;;  %vm406_vm10 = vcmp.eq.f32.partialorder %v1149_v1, inf  ;;  %v409_v40 = vand.u32 2147483648, %v1149_v1 }
 0x168   : > { %v662_v62 = vpop.eup %661  ;;  %v464_v63 = vsel %vm448_vm14, 0.0, %v422_v46  ;;  %vm449_vm0 = vcmp.ne.f32.partialorder %v424_v59, %v424_v59  ;;  %v384_v11 = vmul.f32 %v660_v61, %v1095_v13  ;;  %vm408_vm11 = vcmp.eq.f32.partialorder %v1149_v1, 0.0 }
 0x169   : > { %v664_v3 = vpop.eup %663  ;;  %480 = vst [vmem:[%s1110_s25 + $0x28] sm:$0xff] %v464_v63  ;;  %v465_v5 = vsel %vm449_vm0, 0.0, %v424_v59  ;;  %v426_v8 = vmul.f32 %v662_v62, %v957_v12  ;;  %v379_v9 = vsel %vm378_vm12, %v1087_v4, %v377_v2 }
 0x16a   : > { %481 = vst [vmem:[%s1110_s25 + $0x30] sm:$0xff] %v465_v5  ;;  %v428_v14 = vmul.f32 %v664_v3, %v967_v25  ;;  %v382_v15 = vsel %vm380_vm13, %v381_v60, %v379_v9  ;;  %v386_v16 = vsel %vm385_vm15, %v1095_v13, %v384_v11  ;;  %v666_v12 = vpop.eup %665  ;;  %v395_v13 = vand.u32 2147483648, %v1107_v7 }
 0x16b   : > { %vm450_vm2 = vcmp.ne.f32.partialorder %v426_v8, %v426_v8  ;;  %675 = vrcp.f32 %v382_v15  ;;  %v389_v17 = vsel %vm387_vm1, %v388_v10, %v386_v16  ;;  %v391_v6 = vmul.f32 %v666_v12, %v1107_v7 }
 0x16c   : > { %v466_v44 = vsel %vm450_vm2, 0.0, %v426_v8  ;;  %vm451_vm3 = vcmp.ne.f32.partialorder %v428_v14, %v428_v14  ;;  %677 = vrcp.f32 %v389_v17 }
 0x16d   : > { %v668_v25 = vpop.eup %667  ;;  %482 = vst [vmem:[%s1110_s25 + $0x38] sm:$0xff] %v466_v44  ;;  %v467_v4 = vsel %vm451_vm3, 0.0, %v428_v14  ;;  %v393_v19 = vsel %vm392_vm4, %v1107_v7, %v391_v6 }
 0x16e   : > { %v670_v20 = vpop.eup %669  ;;  %483 = vst [vmem:[%s1110_s25 + $0x40] sm:$0xff] %v467_v4  ;;  %v430_v18 = vmul.f32 %v668_v25, %v971_v28  ;;  %v396_v32 = vsel %vm394_vm5, %v395_v13, %v393_v19  ;;  %v402_v28 = vand.u32 2147483648, %v1143_v58 }
 0x16f   : > { %v432_v29 = vmul.f32 %v670_v20, %v981_v37  ;;  %679 = vrcp.f32 %v396_v32  ;;  %v672_v33 = vpop.eup %671 }
 0x170   : > { %vm452_vm6 = vcmp.ne.f32.partialorder %v430_v18, %v430_v18  ;;  %v398_v36 = vmul.f32 %v672_v33, %v1143_v58  ;;  %v674_v22 = vpop.eup %673 }
 0x171   : > { %v468_v34 = vsel %vm452_vm6, 0.0, %v430_v18  ;;  %vm453_vm7 = vcmp.ne.f32.partialorder %v432_v29, %v432_v29  ;;  %v405_v21 = vmul.f32 %v674_v22, %v1149_v1 }
 0x172   : > { %484 = vst [vmem:[%s1110_s25 + $0x48] sm:$0xff] %v468_v34  ;;  %v469_v35 = vsel %vm453_vm7, 0.0, %v432_v29  ;;  %v400_v7 = vsel %vm399_vm8, %v1143_v58, %v398_v36 }
 0x173   : > { %485 = vst [vmem:[%s1110_s25 + $0x50] sm:$0xff] %v469_v35  ;;  %v403_v54 = vsel %vm401_vm9, %v402_v28, %v400_v7  ;;  %v407_v41 = vsel %vm406_vm10, %v1149_v1, %v405_v21 }
 0x174   : > { %681 = vrcp.f32 %v403_v54  ;;  %v410_v24 = vsel %vm408_vm11, %v409_v40, %v407_v41 }
 0x175   : > { %v676_v37 = vpop.eup %675  ;;  %683 = vrcp.f32 %v410_v24 }
 0x176   : > { %v678_v23 = vpop.eup %677  ;;  %v434_v39 = vmul.f32 %v676_v37, %v985_v38 }
 0x177   : > { %v436_v45 = vmul.f32 %v678_v23, %v995_v47 }
 0x178   : > { %vm454_vm12 = vcmp.ne.f32.partialorder %v434_v39, %v434_v39 }
 0x179   : > { %v470_v42 = vsel %vm454_vm12, 0.0, %v434_v39  ;;  %vm455_vm13 = vcmp.ne.f32.partialorder %v436_v45, %v436_v45  ;;  %v680_v38 = vpop.eup %679 }
 0x17a   : > { %486 = vst [vmem:[%s1110_s25 + $0x58] sm:$0xff] %v470_v42  ;;  %v471_v43 = vsel %vm455_vm13, 0.0, %v436_v45  ;;  %v438_v26 = vmul.f32 %v680_v38, %v999_v48 }
 0x17b   : > { %487 = vst [vmem:[%s1110_s25 + $0x60] sm:$0xff] %v471_v43 }
 0x17c   : > { %vm456_vm14 = vcmp.ne.f32.partialorder %v438_v26, %v438_v26 }
 0x17d   : > { %v472_v47 = vsel %vm456_vm14, 0.0, %v438_v26 }
 0x17e   : > { %488 = vst [vmem:[%s1110_s25 + $0x68] sm:$0xff] %v472_v47  ;;  %v682_v49 = vpop.eup %681 }
 0x17f   : > { %v440_v50 = vmul.f32 %v682_v49, %v1009_v51  ;;  %v684_v53 = vpop.eup %683 }
 0x180   : > { %v442_v30 = vmul.f32 %v684_v53, %v1013_v52 }
 0x181   : > { %vm457_vm15 = vcmp.ne.f32.partialorder %v440_v50, %v440_v50 }
 0x182   : > { %v473_v55 = vsel %vm457_vm15, 0.0, %v440_v50  ;;  %vm458_vm0 = vcmp.ne.f32.partialorder %v442_v30, %v442_v30 }
 0x183   : > { %489 = vst [vmem:[%s1110_s25 + $0x70] sm:$0xff] %v473_v55  ;;  %v474_v48 = vsel %vm458_vm0, 0.0, %v442_v30 }
 0x184   : > { %490 = vst [vmem:[%s1110_s25 + $0x78] sm:$0xff] %v474_v48 }
 0x185   : > { %698 = shalt.err (!%p695_p3)
}
 0x186   : > { %s699_s11 = scalar_lea.hbm %s1205_s30, 2048  ;;  %s703_s18 = scalar_lea.hbm %s1254_s1, 4096 }
 0x187   : > { %p700_p4 = scmp.ne.s32.totalorder %s1205_s30, %s699_s11  ;;  %p704_p9 = scmp.lt.u32.totalorder %s1205_s30, %s1254_s1 }
 0x188   : > { %p705_p10 = scmp.lt.u32.totalorder %s703_s18, %s699_s11  ;;  %p707_p12 = scmp.lt.u32.totalorder %s699_s11, %s1205_s30 }
 0x189   : > { %p701_p7 = pnand %p700_p4, %p800_p5 }
 0x18a   : > { %p706_p11 = por %p705_p10, %p704_p9 }
 0x18b   : > { %p702_p8 = pneg %p701_p7 }
 0x18c   : > { %p708_p13 = por %p707_p12, %p706_p11 }
 0x18e   : > { %p709_p0 = pnand %p708_p13, %p702_p8 }
 0x190   : > { %712 = shalt.err (!%p709_p0)
}
 0x191   : > { %s750_s21 = smov 128   ;;  %s751_s22 = smov 8  }
 0x192   : > { %580 = dma.vmem_to_hbm [thread:$0]  (%p800_p5), %s1207_s27, 2048, %s1205_s30, %s1212_s2, %s750_s21, %s750_s21, %s751_s22  }
 0x193 PF: > { %p586_p1 = scmp.ge.s32.totalorder %s747_s9, 2  ;;  %s520_s23 = sand.u32 1, %s735_s6  }
 0x194   : > { %s521_s24 = scalar_lea.sflag [#allocation3], %s520_s23 }
 0x195   : > { %p583_p2 = pnand %p586_p1, %p804_p6 }
 0x197   : > { %730 = dma.done.wait (!%p583_p2), %s521_s24, 2048  }
 0x198   : > { %732 = vsyncadd (!%p583_p2), %s521_s24, 4294965248  ;;  %p11_p3 = scmp.ge.s32.totalorder %s787_s12, 4   ;;  %s1257_s6 = smov %s739_s7 }
 0x199   : > { %s1258_s7 = smov %s743_s8  ;;  %s1259_s8 = smov %s798_s15 }
 0x19a   : > { %s1260_s9 = smov %s787_s12  ;;  %13 = sbr.rel (!%p11_p3) target bundleno = 3 (0x3), region = 59 }
 0x1a1   :  { %526 = vsyncpa [#allocation3], 1 }
 0x1a2   :  { %528 = vsyncpa [#allocation3 + $0x1], 1 }

// kernel: forward.5
= control target key start
LH: loop header
LB: loop body
LE: loop exit
PB: predicated region body
PF: predicated region fallthrough
CT: control target
= control target key end

     0   :  { %vm86_vm0 = vcmask 130048   ;;  %s390_s1 = inlined_call_operand.vmem [shape: bf16[16,128], index: 1, kind: input, shape index: {}]   ;;  %s391_s0 = inlined_call_operand.vmem [shape: bf16[128,16], index: 0, kind: input, shape index: {}]   ;;  %s392_s2 = inlined_call_operand.vmem [shape: f32[1,128], index: 2, kind: input, shape index: {}]   ;;  %s393_s3 = inlined_call_operand.vmem [shape: f32[128,128], index: 3, kind: output, shape index: {}]  }
   0x1   :  { %v275_v0 = vld [vmem:[%s390_s1] sm:$0xff]   ;;  %v278_v3 = vld [vmem:[%s391_s0 + $0x8] sm:$0xff]   ;;  %v280_v5 = vld [vmem:[%s391_s0 + $0x10] sm:$0xff]  }
   0x2   :  { %v276_v1 = vld [vmem:[%s391_s0] sm:$0xff]   ;;  %255 = vmatprep.subr.bf16.mxu0 %v275_v0  ;;  %273 = vmatprep.subr.bf16.mxu1 %v275_v0  ;;  %v279_v4 = vld [vmem:[%s391_s0 + $0x28] sm:$0xff]   ;;  %v281_v6 = vld [vmem:[%s391_s0 + $0x30] sm:$0xff]  }
   0x3   :  { %v277_v2 = vld [vmem:[%s391_s0 + $0x20] sm:$0xff]   ;;  %256 = vmatpush3.bf16.msra.mxu0 %v275_v0  ;;  %274 = vmatpush3.bf16.msra.mxu1 %v275_v0  ;;  %v282_v7 = vld [vmem:[%s391_s0 + $0x18] sm:$0xff]  }
   0x4   :  { %257 = vmatprep.mubr.msk.bf16.mxu0 %vm86_vm0, %v276_v1  ;;  %265 = vmatprep.mubr.msk.bf16.mxu1 %vm86_vm0, %v277_v2  ;;  %v283_v8 = vld [vmem:[%s391_s0 + $0x38] sm:$0xff]   ;;  %v228_v9 = vld [vmem:[%s392_s2] ss:$0 sm:$0xff] }
   0x6   :  { %258 = vmatmul.mubr.msk.bf16.vlgmr.msra.gmra.mrb[0].mxu0 %vm86_vm0, %v278_v3  ;;  %266 = vmatmul.mubr.msk.bf16.vlgmr.msra.gmra.mrb[0].mxu1 %vm86_vm0, %v279_v4 }
   0x7   :  { %261 = vmatprep.mubr.msk.bf16.mxu0 %vm86_vm0, %v280_v5  ;;  %269 = vmatprep.mubr.msk.bf16.mxu1 %vm86_vm0, %v281_v6 }
   0xe   :  { %262 = vmatmul.mubr.msk.bf16.gmra.mrb[4].mxu0 %vm86_vm0, %v282_v7  ;;  %270 = vmatmul.mubr.msk.bf16.gmra.mrb[4].mxu1 %vm86_vm0, %v283_v8 }
  0xd9   :  { %v259_v10 = vpop.f32.mrb[0].mxu0  ;;  %v267_v11 = vpop.f32.mrb[0].mxu1 }
  0xda   :  { %v154_v12 = vadd.f32 %v259_v10, %v228_v9  ;;  %v186_v13 = vadd.f32 %v267_v11, %v228_v9  ;;  %v145_v14 = vpop.f32.mrb[1].mxu0  ;;  %v177_v15 = vpop.f32.mrb[1].mxu1 }
  0xdb   :  { %v146_v16 = vadd.f32 %v228_v9, %v145_v14  ;;  %v178_v17 = vadd.f32 %v228_v9, %v177_v15  ;;  %v260_v18 = vpop.f32.mrb[2].mxu0  ;;  %v268_v19 = vpop.f32.mrb[2].mxu1 }
  0xdc   :  { %210 = vst [vmem:[%s393_s3 + $0x10] sm:$0xff] %v154_v12  ;;  %218 = vst [vmem:[%s393_s3 + $0x50] sm:$0xff] %v186_v13  ;;  %v157_v20 = vadd.f32 %v260_v18, %v228_v9  ;;  %v189_v21 = vadd.f32 %v268_v19, %v228_v9  ;;  %v148_v22 = vpop.f32.mrb[3].mxu0  ;;  %v180_v23 = vpop.f32.mrb[3].mxu1 }
  0xdd   :  { %208 = vst [vmem:[%s393_s3] sm:$0xff] %v146_v16  ;;  %216 = vst [vmem:[%s393_s3 + $0x40] sm:$0xff] %v178_v17  ;;  %v149_v24 = vadd.f32 %v228_v9, %v148_v22  ;;  %v181_v25 = vadd.f32 %v228_v9, %v180_v23 }
  0xde   :  { %211 = vst [vmem:[%s393_s3 + $0x18] sm:$0xff] %v157_v20  ;;  %219 = vst [vmem:[%s393_s3 + $0x58] sm:$0xff] %v189_v21 }
  0xdf   :  { %209 = vst [vmem:[%s393_s3 + $0x8] sm:$0xff] %v149_v24  ;;  %217 = vst [vmem:[%s393_s3 + $0x48] sm:$0xff] %v181_v25 }
  0xe1   :  { %v263_v26 = vpop.f32.mrb[4].mxu0  ;;  %v271_v27 = vpop.f32.mrb[4].mxu1 }
  0xe2   :  { %v170_v28 = vadd.f32 %v263_v26, %v228_v9  ;;  %v202_v29 = vadd.f32 %v271_v27, %v228_v9  ;;  %v161_v30 = vpop.f32.mrb[5].mxu0  ;;  %v193_v31 = vpop.f32.mrb[5].mxu1 }
  0xe3   :  { %v162_v32 = vadd.f32 %v228_v9, %v161_v30  ;;  %v194_v33 = vadd.f32 %v228_v9, %v193_v31  ;;  %v264_v34 = vpop.f32.mrb[6].mxu0  ;;  %v272_v35 = vpop.f32.mrb[6].mxu1 }
  0xe4   :  { %214 = vst [vmem:[%s393_s3 + $0x30] sm:$0xff] %v170_v28  ;;  %222 = vst [vmem:[%s393_s3 + $0x70] sm:$0xff] %v202_v29  ;;  %v173_v36 = vadd.f32 %v264_v34, %v228_v9  ;;  %v205_v37 = vadd.f32 %v272_v35, %v228_v9  ;;  %v164_v38 = vpop.f32.mrb[7].mxu0  ;;  %v196_v39 = vpop.f32.mrb[7].mxu1 }
  0xe5   :  { %212 = vst [vmem:[%s393_s3 + $0x20] sm:$0xff] %v162_v32  ;;  %220 = vst [vmem:[%s393_s3 + $0x60] sm:$0xff] %v194_v33  ;;  %v165_v40 = vadd.f32 %v228_v9, %v164_v38  ;;  %v197_v41 = vadd.f32 %v228_v9, %v196_v39 }
  0xe6   :  { %215 = vst [vmem:[%s393_s3 + $0x38] sm:$0xff] %v173_v36  ;;  %223 = vst [vmem:[%s393_s3 + $0x78] sm:$0xff] %v205_v37 }
  0xe7   :  { %213 = vst [vmem:[%s393_s3 + $0x28] sm:$0xff] %v165_v40  ;;  %221 = vst [vmem:[%s393_s3 + $0x68] sm:$0xff] %v197_v41 }

// kernel: forward.6
= control target key start
LH: loop header
LB: loop body
LE: loop exit
PB: predicated region body
PF: predicated region fallthrough
CT: control target
= control target key end

     0   :  { %vm126_vm0 = vcmask 785408   ;;  %s480_s1 = inlined_call_operand.vmem [shape: bf16[96,128], index: 1, kind: input, shape index: {}]   ;;  %s481_s0 = inlined_call_operand.vmem [shape: bf16[128,96], index: 0, kind: input, shape index: {}]   ;;  %s482_s2 = inlined_call_operand.vmem [shape: f32[1,128], index: 2, kind: input, shape index: {}]   ;;  %s483_s3 = inlined_call_operand.vmem [shape: f32[128,128], index: 3, kind: output, shape index: {}]  }
   0x1   :  { %v345_v0 = vld [vmem:[%s480_s1] sm:$0xff]   ;;  %v346_v1 = vld [vmem:[%s480_s1 + $0x8] sm:$0xff]   ;;  %v347_v2 = vld [vmem:[%s480_s1 + $0x10] sm:$0xff]  }
   0x2   :  { %305 = vmatprep.subr.bf16.mxu0 %v345_v0  ;;  %333 = vmatprep.subr.bf16.mxu1 %v345_v0  ;;  %v351_v3 = vld [vmem:[%s481_s0] sm:$0xff]   ;;  %v348_v5 = vld [vmem:[%s480_s1 + $0x18] sm:$0xff]   ;;  %v350_v7 = vld [vmem:[%s480_s1 + $0x28] sm:$0xff]  }
   0x3   :  { %306 = vmatpush3.bf16.msra.mxu0 %v345_v0  ;;  %339 = vmatpush3.bf16.msra.mxu1 %v345_v0  ;;  %v352_v4 = vld [vmem:[%s481_s0 + $0x20] sm:$0xff]   ;;  %v353_v8 = vld [vmem:[%s481_s0 + $0x8] sm:$0xff]   ;;  %v355_v10 = vld [vmem:[%s481_s0 + $0x10] sm:$0xff]  }
   0x4   :  { %307 = vmatprep.subr.bf16.mxu0 %v346_v1  ;;  %334 = vmatprep.subr.bf16.mxu1 %v346_v1  ;;  %v349_v6 = vld [vmem:[%s480_s1 + $0x20] sm:$0xff]   ;;  %v354_v9 = vld [vmem:[%s481_s0 + $0x28] sm:$0xff]   ;;  %v356_v11 = vld [vmem:[%s481_s0 + $0x30] sm:$0xff]  }
   0x5   :  { %317 = vmatprep.mubr.msk.bf16.mxu0 %vm126_vm0, %v351_v3  ;;  %325 = vmatprep.mubr.msk.bf16.mxu1 %vm126_vm0, %v352_v4  ;;  %v357_v12 = vld [vmem:[%s481_s0 + $0x18] sm:$0xff]   ;;  %v268_v14 = vld [vmem:[%s482_s2] ss:$0 sm:$0xff] }
   0x6   :  { %v358_v13 = vld [vmem:[%s481_s0 + $0x38] sm:$0xff]  }
   0x7   :  { %308 = vmatpush3.bf16.msra.mxu0 %v346_v1  ;;  %340 = vmatpush3.bf16.msra.mxu1 %v346_v1 }
   0x8   :  { %309 = vmatprep.subr.bf16.mxu0 %v347_v2  ;;  %335 = vmatprep.subr.bf16.mxu1 %v347_v2 }
   0xb   :  { %310 = vmatpush3.bf16.msra.mxu0 %v347_v2  ;;  %341 = vmatpush3.bf16.msra.mxu1 %v347_v2 }
   0xc   :  { %311 = vmatprep.subr.bf16.mxu0 %v348_v5  ;;  %336 = vmatprep.subr.bf16.mxu1 %v348_v5 }
   0xf   :  { %312 = vmatpush3.bf16.msra.mxu0 %v348_v5  ;;  %342 = vmatpush3.bf16.msra.mxu1 %v348_v5 }
  0x10   :  { %313 = vmatprep.subr.bf16.mxu0 %v349_v6  ;;  %337 = vmatprep.subr.bf16.mxu1 %v349_v6 }
  0x13   :  { %314 = vmatpush3.bf16.msra.mxu0 %v349_v6  ;;  %343 = vmatpush3.bf16.msra.mxu1 %v349_v6 }
  0x14   :  { %315 = vmatprep.subr.bf16.mxu0 %v350_v7  ;;  %338 = vmatprep.subr.bf16.mxu1 %v350_v7 }
  0x17   :  { %316 = vmatpush3.bf16.msra.mxu0 %v350_v7  ;;  %344 = vmatpush3.bf16.msra.mxu1 %v350_v7 }
  0x1a   :  { %318 = vmatmul.mubr.msk.bf16.vlgmr.msra.gmra.mrb[0].mxu0 %vm126_vm0, %v353_v8  ;;  %326 = vmatmul.mubr.msk.bf16.vlgmr.msra.gmra.mrb[0].mxu1 %vm126_vm0, %v354_v9 }
  0x1b   :  { %321 = vmatprep.mubr.msk.bf16.mxu0 %vm126_vm0, %v355_v10  ;;  %329 = vmatprep.mubr.msk.bf16.mxu1 %vm126_vm0, %v356_v11 }
  0x22   :  { %322 = vmatmul.mubr.msk.bf16.gmra.mrb[4].mxu0 %vm126_vm0, %v357_v12  ;;  %330 = vmatmul.mubr.msk.bf16.gmra.mrb[4].mxu1 %vm126_vm0, %v358_v13 }
  0xed   :  { %v319_v15 = vpop.f32.mrb[0].mxu0  ;;  %v327_v16 = vpop.f32.mrb[0].mxu1 }
  0xee   :  { %v194_v17 = vadd.f32 %v319_v15, %v268_v14  ;;  %v226_v18 = vadd.f32 %v327_v16, %v268_v14  ;;  %v185_v19 = vpop.f32.mrb[1].mxu0  ;;  %v217_v20 = vpop.f32.mrb[1].mxu1 }
  0xef   :  { %v186_v21 = vadd.f32 %v268_v14, %v185_v19  ;;  %v218_v22 = vadd.f32 %v268_v14, %v217_v20  ;;  %v320_v23 = vpop.f32.mrb[2].mxu0  ;;  %v328_v24 = vpop.f32.mrb[2].mxu1 }
  0xf0   :  { %250 = vst [vmem:[%s483_s3 + $0x10] sm:$0xff] %v194_v17  ;;  %258 = vst [vmem:[%s483_s3 + $0x50] sm:$0xff] %v226_v18  ;;  %v197_v25 = vadd.f32 %v320_v23, %v268_v14  ;;  %v229_v26 = vadd.f32 %v328_v24, %v268_v14  ;;  %v188_v27 = vpop.f32.mrb[3].mxu0  ;;  %v220_v28 = vpop.f32.mrb[3].mxu1 }
  0xf1   :  { %248 = vst [vmem:[%s483_s3] sm:$0xff] %v186_v21  ;;  %256 = vst [vmem:[%s483_s3 + $0x40] sm:$0xff] %v218_v22  ;;  %v189_v29 = vadd.f32 %v268_v14, %v188_v27  ;;  %v221_v30 = vadd.f32 %v268_v14, %v220_v28 }
  0xf2   :  { %251 = vst [vmem:[%s483_s3 + $0x18] sm:$0xff] %v197_v25  ;;  %259 = vst [vmem:[%s483_s3 + $0x58] sm:$0xff] %v229_v26 }
  0xf3   :  { %249 = vst [vmem:[%s483_s3 + $0x8] sm:$0xff] %v189_v29  ;;  %257 = vst [vmem:[%s483_s3 + $0x48] sm:$0xff] %v221_v30 }
  0xf5   :  { %v323_v31 = vpop.f32.mrb[4].mxu0  ;;  %v331_v32 = vpop.f32.mrb[4].mxu1 }
  0xf6   :  { %v210_v33 = vadd.f32 %v323_v31, %v268_v14  ;;  %v242_v34 = vadd.f32 %v331_v32, %v268_v14  ;;  %v201_v35 = vpop.f32.mrb[5].mxu0  ;;  %v233_v36 = vpop.f32.mrb[5].mxu1 }
  0xf7   :  { %v202_v37 = vadd.f32 %v268_v14, %v201_v35  ;;  %v234_v38 = vadd.f32 %v268_v14, %v233_v36  ;;  %v324_v39 = vpop.f32.mrb[6].mxu0  ;;  %v332_v40 = vpop.f32.mrb[6].mxu1 }
  0xf8   :  { %254 = vst [vmem:[%s483_s3 + $0x30] sm:$0xff] %v210_v33  ;;  %262 = vst [vmem:[%s483_s3 + $0x70] sm:$0xff] %v242_v34  ;;  %v213_v41 = vadd.f32 %v324_v39, %v268_v14  ;;  %v245_v42 = vadd.f32 %v332_v40, %v268_v14  ;;  %v204_v43 = vpop.f32.mrb[7].mxu0  ;;  %v236_v44 = vpop.f32.mrb[7].mxu1 }
  0xf9   :  { %252 = vst [vmem:[%s483_s3 + $0x20] sm:$0xff] %v202_v37  ;;  %260 = vst [vmem:[%s483_s3 + $0x60] sm:$0xff] %v234_v38  ;;  %v205_v45 = vadd.f32 %v268_v14, %v204_v43  ;;  %v237_v46 = vadd.f32 %v268_v14, %v236_v44 }
  0xfa   :  { %255 = vst [vmem:[%s483_s3 + $0x38] sm:$0xff] %v213_v41  ;;  %263 = vst [vmem:[%s483_s3 + $0x78] sm:$0xff] %v245_v42 }
  0xfb   :  { %253 = vst [vmem:[%s483_s3 + $0x28] sm:$0xff] %v205_v45  ;;  %261 = vst [vmem:[%s483_s3 + $0x68] sm:$0xff] %v237_v46 }

// kernel: forward.8
= control target key start
LH: loop header
LB: loop body
LE: loop exit
PB: predicated region body
PF: predicated region fallthrough
CT: control target
= control target key end

     0   :  { %10 = vsyncpa [#allocation3], 0  ;;  %s1904_s0 = inlined_call_operand.hbm [shape: s8[3,256,256], index: 0, kind: input, shape index: {}]   ;;  %s1905_s1 = inlined_call_operand.vmem [shape: bf16[256,128], index: 1, kind: input, shape index: {}]   ;;  %s1906_s2 = inlined_call_operand.vmem [shape: bf16[3,256,128], index: 2, kind: input, shape index: {}]   ;;  %s1907_s3 = inlined_call_operand.hbm [shape: f32[3,256,128], index: 3, kind: output, shape index: {0}]   ;;  %s1908_s4 = inlined_call_operand.vmem [shape: f32[3,1,128], index: 4, kind: output, shape index: {1}]  }
   0x1   :  { %12 = vsyncpa [#allocation3 + $0x1], 0 }
   0x2   :  { %13 = vsyncpa [#allocation4], 0 }
   0x3   :  { %15 = vsyncpa [#allocation4 + $0x1], 0  ;;  %s1485_s15 = smov 0   ;;  %s1487_s16 = smov 0  }
   0x4   :  { %s1489_s17 = smov 0   ;;  %s1491_s18 = smov 0  }
   0x5   :  { %s1493_s19 = smov 0   ;;  %s1495_s20 = smov 0  }
   0x6   :  { %s1497_s21 = smov 0   ;;  %s1499_s22 = smov 0  }
   0x7 LB: > { %s984_s23 = sadd.s32 4294967295, %s1451_s22   ;;  %s985_s24 = sadd.s32 4294967294, %s1451_s22   ;;  %s1451_s22 = sphi %s1499_s22, %s21_s22   ;;  %s1447_s21 = sphi %s1497_s21, %s1929_s21   ;;  %s1443_s20 = sphi %s1495_s20, %s1928_s20   ;;  %s1439_s19 = sphi %s1493_s19, %s1927_s19   ;;  %s1435_s18 = sphi %s1491_s18, %s1926_s18   ;;  %s1431_s17 = sphi %s1489_s17, %s1925_s17   ;;  %s1427_s16 = sphi %s1487_s16, %s1924_s16   ;;  %s1423_s15 = sphi %s1485_s15, %s1923_s15  }
   0x8   : > { %s30_s25 = sadd.s32 1, %s1443_s20  ;;  %s33_s26 = sadd.s32 1, %s1447_s21 }
   0x9   : > { %p31_p0 = scmp.ge.s32.totalorder %s30_s25, 2  ;;  %s42_s27 = sadd.s32 1, %s1431_s17 }
   0xa   : > { %p49_p1 = scmp.ne.s32.totalorder %s1431_s17, %s1427_s16  ;;  %p50_p2 = scmp.eq.s32.totalorder %s1451_s22, 0 }
   0xb   : > { %s1931_s25 = smov (%p31_p0, %s30_s25), 0  ;;  %s1933_s26 = smov (!%p31_p0, %s33_s26), %s1447_s21 }
   0xc   : > { %1912 = sst [smem:[#allocation8_spill]] %s1931_s25  ;;  %s38_s28 = ssub.s32 %s1443_s20, %s1931_s25 }
   0xd   : > { %p1538_p3 = por %p50_p2, %p49_p1  ;;  %p35_p4 = scmp.ge.s32.totalorder %s1933_s26, 3 }
   0xe   : > { %p55_p5 = scmp.ne.s32.totalorder %s1427_s16, %s1423_s15  ;;  %p56_p6 = scmp.eq.s32.totalorder %s984_s23, 0 }
   0xf   : > { %p128_p7 = scmp.eq.s32.totalorder %s984_s23, 5  ;;  %s1935_s26 = smov (%p35_p4, %s1933_s26), 0 }
  0x10   : > { %1914 = sst [smem:[#allocation9_spill]] %s1935_s26  ;;  %p1546_p8 = por %p56_p6, %p55_p5 }
  0x11   : > { %p1550_p9 = por %p128_p7, %p49_p1  ;;  %s37_s6 = ssub.s32 %s1447_s21, %s1935_s26 }
  0x12   : > { %p134_p10 = scmp.eq.s32.totalorder %s985_s24, 5  ;;  %s39_s7 = sor.u32 %s38_s28, %s37_s6 }
  0x13   : > { %s1916_s5 = scalar_select %p1550_p9, 1, 0 }
  0x14   : > { %p40_p11 = scmp.eq.s32.totalorder %s39_s7, 0  ;;  %p1556_p12 = por %p134_p10, %p55_p5 }
  0x15   : > { %p1220_p13 = scmp.lt.s32.totalorder %s1451_s22, 6  ;;  %s183_s9 = sand.u32 1, %s1431_s17  }
  0x16   : > { %s1917_s8 = scalar_select %p1556_p12, 1, 0 }
  0x17   : > { %s1563_s10 = scalar_select %p40_p11, %s1431_s17, %s42_s27  }
  0x18   : > { %s988_s11 = sshll.u32 %s183_s9, 6  ;;  %s1039_s12 = sshll.u32 %s1443_s20, 3 }
  0x19   : > { %s991_s13 = sshll.u32 %s1447_s21, 4  ;;  %s187_s14 = scalar_lea.vmem [#allocation2], %s988_s11 }
  0x1a   : > { %s197_s23 = sshll.u32 %s187_s14, 4  ;;  %s194_s25 = sadd.s32 %s1039_s12, %s991_s13  ;;  %s1567_s23 = int_to_ptr.vmem [resolvable:$true] %s197_s23 }
  0x1b   : > { %s992_s26 = sshll.u32 %s194_s25, 7  ;;  %p1571_p0 = pnand %p1220_p13, %p1538_p3 }
  0x1c   : > { %s1578_s27 = scalar_lea.hbm %s1904_s0, %s992_s26  ;;  %s1580_s7 = scalar_lea.sflag [#allocation3], %s183_s9 }
  0x1d   : > { %s1323_s11 = scalar_lea.hbm %s1578_s27, 1024  ;;  %p1325_p2 = pneg %p1571_p0 }
  0x1e   : > { %p1324_p1 = scmp.ne.s32.totalorder %s1578_s27, %s1323_s11  ;;  %s1328_s12 = scalar_lea.hbm %s1904_s0, 6144 }
  0x1f   : > { %p1329_p5 = scmp.lt.u32.totalorder %s1578_s27, %s1904_s0  ;;  %p1330_p6 = scmp.lt.u32.totalorder %s1328_s12, %s1323_s11 }
  0x20   : > { %p1326_p3 = pnand %p1325_p2, %p1324_p1  ;;  %p1332_p10 = scmp.lt.u32.totalorder %s1323_s11, %s1578_s27 }
  0x21   : > { %p1331_p7 = por %p1330_p6, %p1329_p5 }
  0x22   : > { %p1327_p4 = pneg %p1326_p3 }
  0x23   : > { %p1333_p11 = por %p1332_p10, %p1331_p7 }
  0x25   : > { %p1334_p13 = pnand %p1333_p11, %p1327_p4 }
  0x27   : > { %1337 = shalt.err (!%p1334_p13)
}
  0x28   : > { %s1338_s9 = scalar_lea.vmem %s1567_s23, 1024  ;;  %s1453_s14 = smov [#allocation2]  }
  0x29   : > { %p1339_p1 = scmp.ne.s32.totalorder %s1567_s23, %s1338_s9  ;;  %s1343_s28 = sshll.u32 %s1453_s14, 4  ;;  %s1344_s28 = int_to_ptr.vmem [resolvable:$false] %s1343_s28 }
  0x2a   : > { %s1345_s6 = scalar_lea.vmem %s1344_s28, 2048  ;;  %p1346_p9 = scmp.lt.s32.totalorder %s1567_s23, %s1344_s28 }
  0x2b   : > { %p1341_p3 = pnand %p1339_p1, %p1325_p2  ;;  %p1347_p5 = scmp.lt.s32.totalorder %s1345_s6, %s1338_s9 }
  0x2d   : > { %p1342_p12 = pneg %p1341_p3  ;;  %p1348_p6 = por %p1347_p5, %p1346_p9 }
  0x2f   : > { %p1349_p7 = pnand %p1348_p6, %p1342_p12 }
  0x31   : > { %1352 = shalt.err (!%p1349_p7)
}
  0x32   : > { %s1454_s11 = smov 256   ;;  %s1455_s25 = smov 16  }
  0x33   : > { %1215 = dma.hbm_to_vmem [thread:$0]  (!%p1571_p0), %s1578_s27, 1024, %s1567_s23, %s1580_s7, %s1454_s11, %s1454_s11, %s1455_s25  }
  0x34   : > { %p993_p2 = scmp.ge.s32.totalorder %s1451_s22, 1  ;;  %p213_p4 = scmp.lt.s32.totalorder %s1451_s22, 7 }
  0x36   : > { %p214_p10 = pnand %p993_p2, %p213_p4 }
  0x37   : > { %s1611_s29 = sand.u32 (!%p214_p10), 1, %s1427_s16  }
  0x38   : > { %217 = sbr.rel (%p214_p10) target bundleno = 446 (0x1be), region = 32  ;;  %s994_s12 = sshll.u32 (!%p214_p10), %s1611_s29, 6 }
  0x39   : > { %s220_s26 = scalar_lea.sflag (!%p214_p10), [#allocation3], %s1611_s29  ;;  %s1615_s13 = scalar_lea.vmem (!%p214_p10), [#allocation2], %s994_s12 }
  0x3f   : > { %1414 = dma.done.wait (%p1546_p8), %s220_s26, 1024  }
  0x40   : > { %1416 = vsyncadd (%p1546_p8), %s220_s26, 4294966272  ;;  %p257_p9 = scmp.lt.s32.totalorder %s1439_s19, 2  ;;  %s1030_s23 = sshll.u32 %s1435_s18, 7  ;;  %v1291_v20 = vld [vmem:[%s1905_s1 + $0x40] sm:$0xff]   ;;  %v1295_v28 = vld [vmem:[%s1905_s1 + $0x48] sm:$0xff]  }
  0x41   : > { %s758_s24 = sshra.s32 %s1030_s23, 3  ;;  %1080 = vmatprep.subr.bf16.mxu0 %v1291_v20  ;;  %v1293_v26 = vld [vmem:[%s1905_s1] sm:$0xff]   ;;  %v1297_v30 = vld [vmem:[%s1905_s1 + $0x8] sm:$0xff]   ;;  %v1299_v32 = vld [vmem:[%s1905_s1 + $0x50] sm:$0xff]   ;;  %p1032_p8 = scmp.ne.s32.totalorder %s1435_s18, 0 }
  0x42   : > { %s258_s27 = scalar_select %p257_p9, %s1439_s19, 2  ;;  %1081 = vmatpush3.bf16.msra.mxu0 %v1293_v26  ;;  %v1301_v34 = vld [vmem:[%s1905_s1 + $0x10] sm:$0xff]   ;;  %v1303_v36 = vld [vmem:[%s1905_s1 + $0x58] sm:$0xff]   ;;  %v1307_v40 = vld [vmem:[%s1905_s1 + $0x60] sm:$0xff]  }
  0x43   : > { %s1031_s7 = sshll.u32 %s758_s24, 2  ;;  %1082 = vmatprep.subr.bf16.mxu0 %v1295_v28  ;;  %v1305_v38 = vld [vmem:[%s1905_s1 + $0x18] sm:$0xff]   ;;  %v1309_v42 = vld [vmem:[%s1905_s1 + $0x20] sm:$0xff]   ;;  %v1311_v44 = vld [vmem:[%s1905_s1 + $0x68] sm:$0xff]  }
  0x44   : > { %s1040_s9 = sshll.u32 %s258_s27, 7  ;;  %s1627_s6 = scalar_lea.vmem %s1908_s4, %s258_s27  ;;  %v1313_v46 = vld [vmem:[%s1905_s1 + $0x28] sm:$0xff]   ;;  %v1315_v48 = vld [vmem:[%s1905_s1 + $0x70] sm:$0xff]   ;;  %v1319_v52 = vld [vmem:[%s1905_s1 + $0x78] sm:$0xff]  }
  0x45   : > { %s1632_s12 = scalar_lea.vmem %s1906_s2, %s1040_s9  ;;  %v1317_v50 = vld [vmem:[%s1905_s1 + $0x30] sm:$0xff]   ;;  %v1321_v54 = vld [vmem:[%s1905_s1 + $0x38] sm:$0xff]   ;;  %v268_v56 = vld [vmem:[%s1615_s13 + $0x8] sm:$0xff] }
  0x46   : > { %s761_s30 = scalar_lea.vmem %s1632_s12, %s1031_s7  ;;  %v1292_v25 = vld [vmem:[%s1632_s12 + $0x40] sm:$0xff]   ;;  %v1296_v29 = vld [vmem:[%s1632_s12 + $0x48] sm:$0xff]   ;;  %1083 = vmatpush3.bf16.msra.mxu0 %v1297_v30  ;;  %v1300_v33 = vld [vmem:[%s1632_s12 + $0x50] sm:$0xff]   ;;  %v276_v57 = vunpack.c.l.s8.bf16 %v268_v56  ;;  %v278_v58 = vunpack.c.h.s8.bf16 %v268_v56 }
  0x47   : > { %v1635_v0 = vld [vmem:[%s761_s30] sm:$0xff]   ;;  %v1637_v1 = vld [vmem:[%s761_s30 + $0x8] sm:$0xff]   ;;  %v1639_v2 = vld [vmem:[%s761_s30 + $0x10] sm:$0xff]   ;;  %1144 = vmatprep.subr.bf16.mxu1 %v1292_v25  ;;  %1084 = vmatprep.subr.bf16.mxu0 %v1299_v32 }
  0x48   : > { %v1043_v3 = vunpack.c.l.bf16 %v1635_v0  ;;  %v1044_v4 = vunpack.c.h.bf16 %v1635_v0  ;;  %v1047_v5 = vunpack.c.l.bf16 %v1637_v1  ;;  %v1048_v6 = vunpack.c.h.bf16 %v1637_v1  ;;  %v1645_v7 = vld [vmem:[%s761_s30 + $0x18] sm:$0xff]   ;;  %v1647_v8 = vld [vmem:[%s761_s30 + $0x20] sm:$0xff]   ;;  %v1649_v9 = vld [vmem:[%s761_s30 + $0x28] sm:$0xff]   ;;  %451 = vmatprep.mubr.bf16.mxu0 %v276_v57  ;;  %692 = vmatprep.mubr.bf16.mxu1 %v276_v57 }
  0x49   : > { %v1051_v10 = vunpack.c.l.bf16 %v1639_v2  ;;  %v1052_v11 = vunpack.c.h.bf16 %v1639_v2  ;;  %v1055_v12 = vunpack.c.l.bf16 %v1645_v7  ;;  %v1056_v13 = vunpack.c.h.bf16 %v1645_v7  ;;  %v1655_v14 = vld [vmem:[%s761_s30 + $0x30] sm:$0xff]   ;;  %v1657_v15 = vld [vmem:[%s761_s30 + $0x38] sm:$0xff]   ;;  %v1294_v27 = vld [vmem:[%s1632_s12] sm:$0xff]  }
  0x4a   : > { %v1059_v16 = vunpack.c.l.bf16 %v1647_v8  ;;  %v1060_v17 = vunpack.c.h.bf16 %v1647_v8  ;;  %v1063_v18 = vunpack.c.l.bf16 %v1649_v9  ;;  %v1064_v19 = vunpack.c.h.bf16 %v1649_v9  ;;  %1145 = vmatpush3.bf16.msra.mxu1 %v1294_v27  ;;  %v1298_v31 = vld [vmem:[%s1632_s12 + $0x8] sm:$0xff]   ;;  %v1302_v35 = vld [vmem:[%s1632_s12 + $0x10] sm:$0xff]   ;;  %1085 = vmatpush3.bf16.msra.mxu0 %v1301_v34  ;;  %v1304_v37 = vld [vmem:[%s1632_s12 + $0x58] sm:$0xff]  }
  0x4b   : > { %v1067_v21 = vunpack.c.l.bf16 %v1655_v14  ;;  %v1068_v22 = vunpack.c.h.bf16 %v1655_v14  ;;  %v1071_v23 = vunpack.c.l.bf16 %v1657_v15  ;;  %v1072_v24 = vunpack.c.h.bf16 %v1657_v15  ;;  %1146 = vmatprep.subr.bf16.mxu1 %v1296_v29  ;;  %1086 = vmatprep.subr.bf16.mxu0 %v1303_v36  ;;  %v1306_v39 = vld [vmem:[%s1632_s12 + $0x18] sm:$0xff]   ;;  %v1308_v41 = vld [vmem:[%s1632_s12 + $0x60] sm:$0xff]   ;;  %v1312_v45 = vld [vmem:[%s1632_s12 + $0x68] sm:$0xff]  }
  0x4c   : > { %v1310_v43 = vld [vmem:[%s1632_s12 + $0x20] sm:$0xff]   ;;  %v1314_v47 = vld [vmem:[%s1632_s12 + $0x28] sm:$0xff]   ;;  %v1316_v49 = vld [vmem:[%s1632_s12 + $0x70] sm:$0xff]  }
  0x4d   : > { %v1318_v51 = vld [vmem:[%s1632_s12 + $0x30] sm:$0xff]   ;;  %v1320_v53 = vld [vmem:[%s1632_s12 + $0x78] sm:$0xff]   ;;  %v267_v59 = vld [vmem:[%s1615_s13] sm:$0xff] }
  0x4e   : > { %1147 = vmatpush3.bf16.msra.mxu1 %v1298_v31  ;;  %1087 = vmatpush3.bf16.msra.mxu0 %v1305_v38  ;;  %v1322_v55 = vld [vmem:[%s1632_s12 + $0x38] sm:$0xff]   ;;  %v275_v60 = vunpack.c.l.s8.bf16 %v267_v59  ;;  %v277_v62 = vunpack.c.h.s8.bf16 %v267_v59  ;;  %v269_v20 = vld [vmem:[%s1615_s13 + $0x10] sm:$0xff]  ;;  %v272_v27 = vld [vmem:[%s1615_s13 + $0x28] sm:$0xff]  ;;  %s995_s12 = sshll.u32 %s1611_s29, 7 }
  0x4f   : > { %1148 = vmatprep.subr.bf16.mxu1 %v1300_v33  ;;  %1088 = vmatprep.subr.bf16.mxu0 %v1307_v40  ;;  %v270_v61 = vld [vmem:[%s1615_s13 + $0x18] sm:$0xff]  ;;  %v279_v25 = vunpack.c.l.s8.bf16 %v269_v20  ;;  %v281_v28 = vunpack.c.h.s8.bf16 %v269_v20  ;;  %v284_v29 = vunpack.c.l.s8.bf16 %v272_v27  ;;  %v271_v30 = vld [vmem:[%s1615_s13 + $0x20] sm:$0xff]  ;;  %v286_v32 = vunpack.c.h.s8.bf16 %v272_v27  ;;  %v273_v36 = vld [vmem:[%s1615_s13 + $0x30] sm:$0xff] }
  0x50   : > { %v280_v63 = vunpack.c.l.s8.bf16 %v270_v61  ;;  %v282_v26 = vunpack.c.h.s8.bf16 %v270_v61  ;;  %v283_v31 = vunpack.c.l.s8.bf16 %v271_v30  ;;  %v274_v33 = vld [vmem:[%s1615_s13 + $0x38] sm:$0xff]  ;;  %v285_v34 = vunpack.c.h.s8.bf16 %v271_v30  ;;  %s1742_s13 = scalar_lea.vmem [#allocation5], %s995_s12 }
  0x51   : > { %v290_v38 = vunpack.c.h.s8.bf16 %v274_v33 }
  0x52   : > { %1149 = vmatpush3.bf16.msra.mxu1 %v1302_v35  ;;  %1089 = vmatpush3.bf16.msra.mxu0 %v1309_v42  ;;  %v288_v35 = vunpack.c.l.s8.bf16 %v274_v33 }
  0x53   : > { %1150 = vmatprep.subr.bf16.mxu1 %v1304_v37  ;;  %1090 = vmatprep.subr.bf16.mxu0 %v1311_v44  ;;  %v287_v37 = vunpack.c.l.s8.bf16 %v273_v36 }
  0x56   : > { %1151 = vmatpush3.bf16.msra.mxu1 %v1306_v39  ;;  %1091 = vmatpush3.bf16.msra.mxu0 %v1313_v46  ;;  %v289_v39 = vunpack.c.h.s8.bf16 %v273_v36 }
  0x57   : > { %1152 = vmatprep.subr.bf16.mxu1 %v1308_v41  ;;  %1092 = vmatprep.subr.bf16.mxu0 %v1315_v48 }
  0x5a   : > { %1153 = vmatpush3.bf16.msra.mxu1 %v1310_v43  ;;  %1093 = vmatpush3.bf16.msra.mxu0 %v1317_v50 }
  0x5b   : > { %1154 = vmatprep.subr.bf16.mxu1 %v1312_v45  ;;  %1094 = vmatprep.subr.bf16.mxu0 %v1319_v52 }
  0x5e   : > { %1155 = vmatpush3.bf16.msra.mxu1 %v1314_v47  ;;  %1095 = vmatpush3.bf16.msra.mxu0 %v1321_v54 }
  0x5f   : > { %1156 = vmatprep.subr.bf16.mxu1 %v1316_v49 }
  0x61   : > { %452 = vmatmul.mubr.bf16.vlgmr.msra.gmra.mrb[0].mxu0 %v275_v60 }
  0x62   : > { %1157 = vmatpush3.bf16.msra.mxu1 %v1318_v51  ;;  %459 = vmatprep.mubr.bf16.mxu0 %v278_v58 }
  0x63   : > { %1158 = vmatprep.subr.bf16.mxu1 %v1320_v53 }
  0x66   : > { %1159 = vmatpush3.bf16.msra.mxu1 %v1322_v55 }
  0x69   : > { %693 = vmatmul.mubr.bf16.vlgmr.msra.gmra.mrb[0].mxu1 %v275_v60  ;;  %460 = vmatmul.mubr.bf16.gmra.mrb[4].mxu0 %v277_v62 }
  0x6a   : > { %700 = vmatprep.mubr.bf16.mxu1 %v278_v58  ;;  %467 = vmatprep.mubr.bf16.mxu0 %v280_v63 }
  0x71   : > { %701 = vmatmul.mubr.bf16.gmra.mrb[4].mxu1 %v277_v62  ;;  %468 = vmatmul.mubr.bf16.gmra.mrb[8].mxu0 %v279_v25 }
  0x72   : > { %708 = vmatprep.mubr.bf16.mxu1 %v280_v63  ;;  %475 = vmatprep.mubr.bf16.mxu0 %v282_v26 }
  0x79   : > { %709 = vmatmul.mubr.bf16.gmra.mrb[8].mxu1 %v279_v25  ;;  %476 = vmatmul.mubr.bf16.gmra.mrb[12].mxu0 %v281_v28 }
  0x7a   : > { %716 = vmatprep.mubr.bf16.mxu1 %v282_v26  ;;  %483 = vmatprep.mubr.bf16.mxu0 %v284_v29 }
  0x81   : > { %717 = vmatmul.mubr.bf16.gmra.mrb[12].mxu1 %v281_v28  ;;  %484 = vmatmul.mubr.bf16.gmra.mrb[16].mxu0 %v283_v31 }
  0x82   : > { %724 = vmatprep.mubr.bf16.mxu1 %v284_v29  ;;  %491 = vmatprep.mubr.bf16.mxu0 %v286_v32 }
  0x89   : > { %725 = vmatmul.mubr.bf16.gmra.mrb[16].mxu1 %v283_v31  ;;  %492 = vmatmul.mubr.bf16.gmra.mrb[20].mxu0 %v285_v34 }
  0x8a   : > { %732 = vmatprep.mubr.bf16.mxu1 %v286_v32  ;;  %499 = vmatprep.mubr.bf16.mxu0 %v288_v35 }
  0x91   : > { %733 = vmatmul.mubr.bf16.gmra.mrb[20].mxu1 %v285_v34  ;;  %500 = vmatmul.mubr.bf16.gmra.mrb[24].mxu0 %v287_v37 }
  0x92   : > { %740 = vmatprep.mubr.bf16.mxu1 %v288_v35  ;;  %507 = vmatprep.mubr.bf16.mxu0 %v290_v38 }
  0x99   : > { %741 = vmatmul.mubr.bf16.gmra.mrb[24].mxu1 %v287_v37  ;;  %508 = vmatmul.mubr.bf16.gmra.mrb[28].mxu0 %v289_v39 }
  0x9a   : > { %748 = vmatprep.mubr.bf16.mxu1 %v290_v38 }
  0xa1   : > { %749 = vmatmul.mubr.bf16.gmra.mrb[28].mxu1 %v289_v39 }
 0x134   : > { %v1096_v40 = vpop.f32.mrb[0].mxu0 }
 0x135   : > { %v1097_v42 = vpop.f32.mrb[1].mxu0 }
 0x136   : > { %v1098_v43 = vadd.f32 %v1097_v42, %v1096_v40  ;;  %v1099_v45 = vpop.f32.mrb[2].mxu0 }
 0x137   : > { %v1100_v48 = vpop.f32.mrb[3].mxu0 }
 0x138   : > { %516 = vst [vmem:[%s1742_s13] sm:$0xff] %v1098_v43  ;;  %v1101_v49 = vadd.f32 %v1100_v48, %v1099_v45 }
 0x13a   : > { %517 = vst [vmem:[%s1742_s13 + $0x8] sm:$0xff] %v1101_v49 }
 0x13c   : > { %v1160_v41 = vpop.f32.mrb[0].mxu1  ;;  %v1102_v52 = vpop.f32.mrb[4].mxu0 }
 0x13d   : > { %v1161_v44 = vpop.f32.mrb[1].mxu1  ;;  %v1103_v54 = vpop.f32.mrb[5].mxu0 }
 0x13e   : > { %v1740_v46 = vadd.f32 %v1161_v44, %v1160_v41  ;;  %v1163_v47 = vpop.f32.mrb[2].mxu1  ;;  %v1104_v55 = vadd.f32 %v1103_v54, %v1102_v52  ;;  %v1105_v57 = vpop.f32.mrb[6].mxu0 }
 0x13f   : > { %v1164_v50 = vpop.f32.mrb[3].mxu1  ;;  %v1106_v60 = vpop.f32.mrb[7].mxu0 }
 0x140   : > { %v1745_v51 = vadd.f32 %v1164_v50, %v1163_v47  ;;  %518 = vst [vmem:[%s1742_s13 + $0x10] sm:$0xff] %v1104_v55  ;;  %v1107_v61 = vadd.f32 %v1106_v60, %v1105_v57 }
 0x142   : > { %519 = vst [vmem:[%s1742_s13 + $0x18] sm:$0xff] %v1107_v61 }
 0x144   : > { %v1166_v53 = vpop.f32.mrb[4].mxu1  ;;  %v1108_v20 = vpop.f32.mrb[8].mxu0 }
 0x145   : > { %v1167_v56 = vpop.f32.mrb[5].mxu1  ;;  %v1109_v26 = vpop.f32.mrb[9].mxu0 }
 0x146   : > { %v1748_v58 = vadd.f32 %v1167_v56, %v1166_v53  ;;  %v1169_v59 = vpop.f32.mrb[6].mxu1  ;;  %v1110_v27 = vadd.f32 %v1109_v26, %v1108_v20  ;;  %v1111_v29 = vpop.f32.mrb[10].mxu0 }
 0x147   : > { %v1170_v62 = vpop.f32.mrb[7].mxu1  ;;  %v1112_v32 = vpop.f32.mrb[11].mxu0 }
 0x148   : > { %v1751_v63 = vadd.f32 %v1170_v62, %v1169_v59  ;;  %520 = vst [vmem:[%s1742_s13 + $0x20] sm:$0xff] %v1110_v27  ;;  %v1113_v33 = vadd.f32 %v1112_v32, %v1111_v29 }
 0x14a   : > { %521 = vst [vmem:[%s1742_s13 + $0x28] sm:$0xff] %v1113_v33 }
 0x14c   : > { %v1172_v25 = vpop.f32.mrb[8].mxu1  ;;  %v1114_v36 = vpop.f32.mrb[12].mxu0 }
 0x14d   : > { %v1173_v28 = vpop.f32.mrb[9].mxu1  ;;  %v1115_v38 = vpop.f32.mrb[13].mxu0 }
 0x14e   : > { %v1754_v30 = vadd.f32 %v1173_v28, %v1172_v25  ;;  %v1175_v31 = vpop.f32.mrb[10].mxu1  ;;  %v1116_v39 = vadd.f32 %v1115_v38, %v1114_v36  ;;  %v1117_v41 = vpop.f32.mrb[14].mxu0 }
 0x14f   : > { %v1176_v34 = vpop.f32.mrb[11].mxu1  ;;  %v1118_v44 = vpop.f32.mrb[15].mxu0 }
 0x150   : > { %v1757_v35 = vadd.f32 %v1176_v34, %v1175_v31  ;;  %522 = vst [vmem:[%s1742_s13 + $0x30] sm:$0xff] %v1116_v39  ;;  %v1119_v45 = vadd.f32 %v1118_v44, %v1117_v41 }
 0x152   : > { %523 = vst [vmem:[%s1742_s13 + $0x38] sm:$0xff] %v1119_v45 }
 0x154   : > { %v1178_v37 = vpop.f32.mrb[12].mxu1  ;;  %v1120_v49 = vpop.f32.mrb[16].mxu0 }
 0x155   : > { %v1179_v40 = vpop.f32.mrb[13].mxu1  ;;  %v1121_v52 = vpop.f32.mrb[17].mxu0 }
 0x156   : > { %v1760_v42 = vadd.f32 %v1179_v40, %v1178_v37  ;;  %v1181_v43 = vpop.f32.mrb[14].mxu1  ;;  %v1122_v53 = vadd.f32 %v1121_v52, %v1120_v49  ;;  %v1123_v55 = vpop.f32.mrb[18].mxu0 }
 0x157   : > { %v1182_v47 = vpop.f32.mrb[15].mxu1  ;;  %v1124_v59 = vpop.f32.mrb[19].mxu0 }
 0x158   : > { %v1763_v48 = vadd.f32 %v1182_v47, %v1181_v43  ;;  %524 = vst [vmem:[%s1742_s13 + $0x40] sm:$0xff] %v1122_v53  ;;  %v1125_v60 = vadd.f32 %v1124_v59, %v1123_v55 }
 0x15a   : > { %525 = vst [vmem:[%s1742_s13 + $0x48] sm:$0xff] %v1125_v60 }
 0x15c   : > { %v1184_v50 = vpop.f32.mrb[16].mxu1  ;;  %v1126_v20 = vpop.f32.mrb[20].mxu0 }
 0x15d   : > { %v1185_v54 = vpop.f32.mrb[17].mxu1  ;;  %v1127_v26 = vpop.f32.mrb[21].mxu0 }
 0x15e   : > { %v1766_v56 = vadd.f32 %v1185_v54, %v1184_v50  ;;  %v1187_v57 = vpop.f32.mrb[18].mxu1  ;;  %v1128_v27 = vadd.f32 %v1127_v26, %v1126_v20  ;;  %v1129_v29 = vpop.f32.mrb[22].mxu0 }
 0x15f   : > { %v1188_v61 = vpop.f32.mrb[19].mxu1  ;;  %v1130_v33 = vpop.f32.mrb[23].mxu0 }
 0x160   : > { %v1769_v62 = vadd.f32 %v1188_v61, %v1187_v57  ;;  %526 = vst [vmem:[%s1742_s13 + $0x50] sm:$0xff] %v1128_v27  ;;  %v1131_v34 = vadd.f32 %v1130_v33, %v1129_v29 }
 0x162   : > { %527 = vst [vmem:[%s1742_s13 + $0x58] sm:$0xff] %v1131_v34 }
 0x164   : > { %v1190_v25 = vpop.f32.mrb[20].mxu1  ;;  %v1132_v38 = vpop.f32.mrb[24].mxu0 }
 0x165   : > { %v1191_v28 = vpop.f32.mrb[21].mxu1  ;;  %v1133_v40 = vpop.f32.mrb[25].mxu0 }
 0x166   : > { %v1772_v31 = vadd.f32 %v1191_v28, %v1190_v25  ;;  %v1193_v32 = vpop.f32.mrb[22].mxu1  ;;  %v1134_v41 = vadd.f32 %v1133_v40, %v1132_v38  ;;  %v1135_v44 = vpop.f32.mrb[26].mxu0 }
 0x167   : > { %v1194_v36 = vpop.f32.mrb[23].mxu1  ;;  %v1136_v49 = vpop.f32.mrb[27].mxu0 }
 0x168   : > { %v1775_v37 = vadd.f32 %v1194_v36, %v1193_v32  ;;  %528 = vst [vmem:[%s1742_s13 + $0x60] sm:$0xff] %v1134_v41  ;;  %v1137_v50 = vadd.f32 %v1136_v49, %v1135_v44  ;;  %v1456_v32 = vmov (!%p1032_p8), 0.0  }
 0x169   : > { %798 = vst [vmem:[%s1627_s6] sm:$0x1] (!%p1032_p8), %v1456_v32 }
 0x16a   : > { %529 = vst [vmem:[%s1742_s13 + $0x68] sm:$0xff] %v1137_v50 }
 0x16c   : > { %v1196_v39 = vpop.f32.mrb[24].mxu1  ;;  %v1138_v54 = vpop.f32.mrb[28].mxu0 }
 0x16d   : > { %v1197_v43 = vpop.f32.mrb[25].mxu1  ;;  %v1139_v57 = vpop.f32.mrb[29].mxu0 }
 0x16e   : > { %v1778_v45 = vadd.f32 %v1197_v43, %v1196_v39  ;;  %v1199_v47 = vpop.f32.mrb[26].mxu1  ;;  %v1140_v59 = vadd.f32 %v1139_v57, %v1138_v54  ;;  %v1141_v61 = vpop.f32.mrb[30].mxu0 }
 0x16f   : > { %v1200_v52 = vpop.f32.mrb[27].mxu1  ;;  %v1142_v26 = vpop.f32.mrb[31].mxu0 }
 0x170   : > { %v1781_v53 = vadd.f32 %v1200_v52, %v1199_v47  ;;  %530 = vst [vmem:[%s1742_s13 + $0x70] sm:$0xff] %v1140_v59  ;;  %v1143_v27 = vadd.f32 %v1142_v26, %v1141_v61 }
 0x172   : > { %531 = vst [vmem:[%s1742_s13 + $0x78] sm:$0xff] %v1143_v27  ;;  %797 = sbr.rel (%p1032_p8) target bundleno = 377 (0x179), region = 40 }
 0x174   : > { %v1202_v55 = vpop.f32.mrb[28].mxu1 }
 0x175   : > { %v1203_v60 = vpop.f32.mrb[29].mxu1 }
 0x176   : > { %v1784_v20 = vadd.f32 %v1203_v60, %v1202_v55  ;;  %v1205_v25 = vpop.f32.mrb[30].mxu1 }
 0x177   : > { %v1206_v28 = vpop.f32.mrb[31].mxu1 }
 0x178   : > { %v1787_v29 = vadd.f32 %v1206_v28, %v1205_v25 }
 0x179 PF: > { %v800_v33 = vmul.f32 %v1740_v46, %v1043_v3  ;;  %v801_v34 = vmul.f32 %v1745_v51, %v1044_v4  ;;  %s1034_s30 = sshll.u32 %s1435_s18, 4  ;;  %s1035_s26 = sshll.u32 %s1439_s19, 5  ;;  %v802_v36 = vmul.f32 %v1748_v58, %v1047_v5  ;;  %v803_v0 = vmul.f32 %v1751_v63, %v1048_v6 }
 0x17a   : > { %s858_s23 = sshll.u32 %s1742_s13, 4  ;;  %s855_s24 = sadd.s32 %s1035_s26, %s1034_s30  ;;  %s1804_s23 = int_to_ptr.vmem [resolvable:$true] %s858_s23 }
 0x17b   : > { %s1036_s27 = sshll.u32 %s855_s24, 7  ;;  %v816_v3 = vadd.f32 %v801_v34, %v800_v33  ;;  %s840_s9 = scalar_lea.sflag [#allocation4], %s1611_s29 }
 0x17c   : > { %s1812_s19 = scalar_lea.hbm %s1907_s3, %s1036_s27  ;;  %s1353_s14 = scalar_lea.vmem %s1804_s23, 2048 }
 0x17d   : > { %p1354_p12 = scmp.ne.s32.totalorder %s1804_s23, %s1353_s14  ;;  %p1919_p0 = scmp.ne.s32.totalorder %s1916_s5, 0 }
 0x17e   : > { %s1457_s28 = smov [#allocation5]  }
 0x17f   : > { %p1355_p11 = pnand %p1354_p12, %p1919_p0  ;;  %s1357_s11 = sshll.u32 %s1457_s28, 4  ;;  %s1358_s11 = int_to_ptr.vmem [resolvable:$false] %s1357_s11 }
 0x180   : > { %s1359_s25 = scalar_lea.vmem %s1358_s11, 4096  ;;  %p1360_p1 = scmp.lt.s32.totalorder %s1804_s23, %s1358_s11 }
 0x181   : > { %p1356_p13 = pneg %p1355_p11  ;;  %p1361_p3 = scmp.lt.s32.totalorder %s1359_s25, %s1353_s14 }
 0x183   : > { %p1362_p5 = por %p1361_p3, %p1360_p1 }
 0x185   : > { %p1363_p6 = pnand %p1362_p5, %p1356_p13 }
 0x187   : > { %1366 = shalt.err (!%p1363_p6)
}
 0x188   : > { %s1367_s12 = scalar_lea.hbm %s1812_s19, 2048  ;;  %s1371_s26 = scalar_lea.hbm %s1907_s3, 12288 }
 0x189   : > { %p1368_p7 = scmp.ne.s32.totalorder %s1812_s19, %s1367_s12  ;;  %p1372_p10 = scmp.lt.u32.totalorder %s1812_s19, %s1907_s3 }
 0x18a   : > { %p1373_p9 = scmp.lt.u32.totalorder %s1371_s26, %s1367_s12  ;;  %p1375_p12 = scmp.lt.u32.totalorder %s1367_s12, %s1812_s19 }
 0x18b   : > { %p1369_p2 = pnand %p1368_p7, %p1919_p0 }
 0x18c   : > { %p1374_p8 = por %p1373_p9, %p1372_p10 }
 0x18d   : > { %p1370_p4 = pneg %p1369_p2 }
 0x18e   : > { %p1376_p11 = por %p1375_p12, %p1374_p8 }
 0x190   : > { %p1377_p13 = pnand %p1376_p11, %p1370_p4 }
 0x192   : > { %1380 = shalt.err (!%p1377_p13)
}
 0x193   : > { %s1458_s7 = smov 128   ;;  %s1459_s18 = smov 8   ;;  %v804_v1 = vmul.f32 %v1754_v30, %v1051_v10  ;;  %v817_v4 = vadd.f32 %v816_v3, %v802_v36  ;;  %v805_v5 = vmul.f32 %v1757_v35, %v1052_v11  ;;  %v806_v46 = vmul.f32 %v1760_v42, %v1055_v12 }
 0x194   : > { %1210 = dma.vmem_to_hbm [thread:$0]  (%p1919_p0), %s1804_s23, 2048, %s1812_s19, %s840_s9, %s1458_s7, %s1458_s7, %s1459_s18   ;;  %v807_v58 = vmul.f32 %v1763_v48, %v1056_v13  ;;  %v808_v10 = vmul.f32 %v1766_v56, %v1059_v16  ;;  %v809_v2 = vmul.f32 %v1769_v62, %v1060_v17  ;;  %v810_v12 = vmul.f32 %v1772_v31, %v1063_v18 }
 0x195   : > { %v818_v6 = vadd.f32 %v817_v4, %v803_v0  ;;  %v811_v7 = vmul.f32 %v1775_v37, %v1064_v19  ;;  %v812_v16 = vmul.f32 %v1778_v45, %v1067_v21  ;;  %v813_v8 = vmul.f32 %v1781_v53, %v1068_v22  ;;  %v799_v22 = vld [vmem:[%s1627_s6] sm:$0x1] }
 0x196   : > { %v814_v18 = vmul.f32 %v1784_v20, %v1071_v23  ;;  %v815_v19 = vmul.f32 %v1787_v29, %v1072_v24 }
 0x197   : > { %v819_v51 = vadd.f32 %v818_v6, %v804_v1 }
 0x199   : > { %v820_v63 = vadd.f32 %v819_v51, %v805_v5 }
 0x19b   : > { %v821_v30 = vadd.f32 %v820_v63, %v806_v46 }
 0x19d   : > { %v822_v11 = vadd.f32 %v821_v30, %v807_v58 }
 0x19f   : > { %v823_v35 = vadd.f32 %v822_v11, %v808_v10 }
 0x1a1   : > { %v824_v13 = vadd.f32 %v823_v35, %v809_v2 }
 0x1a3   : > { %v825_v42 = vadd.f32 %v824_v13, %v810_v12 }
 0x1a5   : > { %v826_v17 = vadd.f32 %v825_v42, %v811_v7 }
 0x1a7   : > { %v827_v9 = vadd.f32 %v826_v17, %v812_v16 }
 0x1a9   : > { %v828_v48 = vadd.f32 %v827_v9, %v813_v8 }
 0x1ab   : > { %v829_v56 = vadd.f32 %v828_v48, %v814_v18 }
 0x1ad   : > { %v830_v62 = vadd.f32 %v829_v56, %v815_v19 }
 0x1af   : > { %v831_v21 = vrot.slane %v830_v62, 4 }
 0x1b1   : > { %v832_v31 = vadd.f32 %v831_v21, %v830_v62 }
 0x1b3   : > { %v833_v37 = vrot.slane %v832_v31, 2 }
 0x1b5   : > { %v834_v14 = vadd.f32 %v833_v37, %v832_v31 }
 0x1b7   : > { %v835_v38 = vrot.slane %v834_v14, 1 }
 0x1b9   : > { %v836_v39 = vadd.f32 %v835_v38, %v834_v14 }
 0x1bb   : > { %v837_v40 = vadd.f32 %v836_v39, %v799_v22 }
 0x1bd   : > { %838 = vst [vmem:[%s1627_s6] sm:$0x1] %v837_v40 }
 0x1be PF: > { %p1221_p0 = scmp.ge.s32.totalorder %s1451_s22, 2  ;;  %s876_s5 = sand.u32 1, %s1423_s15  }
 0x1bf   : > { %p1920_p1 = scmp.ne.s32.totalorder %s1917_s8, 0  ;;  %s877_s29 = scalar_lea.sflag [#allocation4], %s876_s5 }
 0x1c1   : > { %p1217_p3 = pnand %p1221_p0, %p1920_p1 }
 0x1c3   : > { %1418 = dma.done.wait (!%p1217_p3), %s877_s29, 2048  }
 0x1c4   : > { %1420 = vsyncadd (!%p1217_p3), %s877_s29, 4294965248  ;;  %s21_s22 = sadd.s32 1, %s1451_s22   ;;  %s1921_s6 = sld [smem:[#allocation8_spill]] }
 0x1c5   : > { %p18_p5 = scmp.ge.s32.totalorder %s21_s22, 8   ;;  %s1922_s23 = sld [smem:[#allocation9_spill]] }
 0x1c6   : > { %s1923_s15 = smov %s1427_s16  ;;  %s1924_s16 = smov %s1431_s17 }
 0x1c7   : > { %s1925_s17 = smov %s1563_s10  ;;  %s1926_s18 = smov %s1443_s20 }
 0x1c8   : > { %s1927_s19 = smov %s1447_s21  ;;  %20 = sbr.rel (!%p18_p5) target bundleno = 7 (0x7), region = 97 }
 0x1ca   : > { %s1928_s20 = smov %s1921_s6 }
 0x1cb   : > { %s1929_s21 = smov %s1922_s23 }
 0x1cf   :  { %888 = vsyncpa [#allocation3], 1 }
 0x1d0   :  { %890 = vsyncpa [#allocation3 + $0x1], 1 }
 0x1d1   :  { %891 = vsyncpa [#allocation4], 1 }
 0x1d2   :  { %893 = vsyncpa [#allocation4 + $0x1], 1 }

// kernel: forward.9
= control target key start
LH: loop header
LB: loop body
LE: loop exit
PB: predicated region body
PF: predicated region fallthrough
CT: control target
= control target key end

     0   :  { %8 = vsyncpa [#allocation3], 0  ;;  %s880_s12 = smov [#allocation2]   ;;  %s1282_s0 = inlined_call_operand.hbm [shape: f32[256,128], index: 0, kind: input, shape index: {}]   ;;  %s1283_s1 = inlined_call_operand.vmem [shape: f32[128,128], index: 1, kind: input, shape index: {}]   ;;  %s1284_s2 = inlined_call_operand.vmem [shape: f32[1,128], index: 2, kind: input, shape index: {}]   ;;  %s1285_s3 = inlined_call_operand.vmem [shape: f32[256,128], index: 3, kind: output, shape index: {}]  }
   0x1   :  { %s14_s13 = sshll.u32 %s880_s12, 4  ;;  %s856_s16 = scalar_lea.hbm %s1282_s0, 4096  ;;  %s15_s13 = int_to_ptr.vmem [resolvable:$true] %s14_s13 }
   0x2   :  { %p857_p0 = scmp.ne.s32.totalorder %s1282_s0, %s856_s16  ;;  %p860_p1 = scmp.lt.u32.totalorder %s856_s16, %s1282_s0 }
   0x4   :  { %p862_p2 = pnand %p860_p1, %p857_p0 }
   0x6   :  { %865 = shalt.err (!%p862_p2)
}
   0x7   :  { %s866_s21 = scalar_lea.vmem %s15_s13, 4096  ;;  %p871_p4 = scmp.lt.s32.totalorder %s15_s13, %s15_s13 }
   0x8   :  { %p867_p3 = scmp.ne.s32.totalorder %s15_s13, %s866_s21  ;;  %p872_p5 = scmp.lt.s32.totalorder %s866_s21, %s866_s21 }
   0xa   :  { %p873_p6 = por %p872_p5, %p871_p4 }
   0xc   :  { %p874_p7 = pnand %p873_p6, %p867_p3 }
   0xe   :  { %877 = shalt.err (!%p874_p7)
}
   0xf   :  { %s881_s22 = smov 128   ;;  %s882_s23 = smov 8  }
  0x10   :  { %20 = dma.hbm_to_vmem [thread:$0]  %s1282_s0, 4096, %s15_s13, [#allocation3], %s881_s22, %s881_s22, %s882_s23  }
  0x11   :  { %878 = dma.done.wait [#allocation3], 4096  }
  0x12   :  { %879 = vsyncadd [#allocation3], 4294963200  ;;  %v28_v0 = vld [vmem:[#allocation2] sm:$0xff]  ;;  %v29_v1 = vld [vmem:[#allocation2 + $0x8] sm:$0xff] }
  0x13   :  { %v30_v2 = vld [vmem:[#allocation2 + $0x10] sm:$0xff]  ;;  %v157_v3 = vadd.f32 %v29_v1, %v28_v0  ;;  %v31_v4 = vld [vmem:[#allocation2 + $0x18] sm:$0xff]  ;;  %v32_v6 = vld [vmem:[#allocation2 + $0x20] sm:$0xff] }
  0x14   :  { %v33_v8 = vld [vmem:[#allocation2 + $0x28] sm:$0xff]  ;;  %v34_v10 = vld [vmem:[#allocation2 + $0x30] sm:$0xff]  ;;  %v35_v12 = vld [vmem:[#allocation2 + $0x38] sm:$0xff] }
  0x15   :  { %v158_v5 = vadd.f32 %v157_v3, %v30_v2  ;;  %v36_v14 = vld [vmem:[#allocation2 + $0x40] sm:$0xff]  ;;  %v37_v16 = vld [vmem:[#allocation2 + $0x48] sm:$0xff]  ;;  %v38_v18 = vld [vmem:[#allocation2 + $0x50] sm:$0xff] }
  0x16   :  { %v39_v20 = vld [vmem:[#allocation2 + $0x58] sm:$0xff]  ;;  %v40_v22 = vld [vmem:[#allocation2 + $0x60] sm:$0xff]  ;;  %v41_v24 = vld [vmem:[#allocation2 + $0x68] sm:$0xff] }
  0x17   :  { %v159_v7 = vadd.f32 %v158_v5, %v31_v4  ;;  %v915_v26 = vld [vmem:[#allocation2 + $0x70] sm:$0xff]  ;;  %v917_v28 = vld [vmem:[#allocation2 + $0x78] sm:$0xff]  ;;  %v920_v30 = vld [vmem:[#allocation2 + $0x80] sm:$0xff] }
  0x18   :  { %v923_v32 = vld [vmem:[#allocation2 + $0x88] sm:$0xff]  ;;  %v926_v34 = vld [vmem:[#allocation2 + $0x90] sm:$0xff]  ;;  %v929_v36 = vld [vmem:[#allocation2 + $0x98] sm:$0xff] }
  0x19   :  { %v160_v9 = vadd.f32 %v159_v7, %v32_v6  ;;  %v932_v38 = vld [vmem:[#allocation2 + $0xa0] sm:$0xff]  ;;  %v935_v40 = vld [vmem:[#allocation2 + $0xa8] sm:$0xff]  ;;  %v938_v42 = vld [vmem:[#allocation2 + $0xb0] sm:$0xff] }
  0x1a   :  { %v941_v44 = vld [vmem:[#allocation2 + $0xb8] sm:$0xff] }
  0x1b   :  { %v161_v11 = vadd.f32 %v160_v9, %v33_v8 }
  0x1d   :  { %v162_v13 = vadd.f32 %v161_v11, %v34_v10 }
  0x1f   :  { %v163_v15 = vadd.f32 %v162_v13, %v35_v12 }
  0x21   :  { %v164_v17 = vadd.f32 %v163_v15, %v36_v14 }
  0x23   :  { %v165_v19 = vadd.f32 %v164_v17, %v37_v16 }
  0x25   :  { %v166_v21 = vadd.f32 %v165_v19, %v38_v18 }
  0x27   :  { %v167_v23 = vadd.f32 %v166_v21, %v39_v20 }
  0x29   :  { %v168_v25 = vadd.f32 %v167_v23, %v40_v22 }
  0x2b   :  { %v169_v27 = vadd.f32 %v168_v25, %v41_v24 }
  0x2d   :  { %v170_v29 = vadd.f32 %v169_v27, %v915_v26 }
  0x2f   :  { %v171_v31 = vadd.f32 %v170_v29, %v917_v28 }
  0x31   :  { %v172_v33 = vadd.f32 %v171_v31, %v920_v30 }
  0x33   :  { %v173_v35 = vadd.f32 %v172_v33, %v923_v32 }
  0x35   :  { %v174_v37 = vadd.f32 %v173_v35, %v926_v34 }
  0x37   :  { %v175_v39 = vadd.f32 %v174_v37, %v929_v36 }
  0x39   :  { %v176_v41 = vadd.f32 %v175_v39, %v932_v38 }
  0x3b   :  { %v177_v43 = vadd.f32 %v176_v41, %v935_v40 }
  0x3d   :  { %v178_v45 = vadd.f32 %v177_v43, %v938_v42 }
  0x3f   :  { %v179_v46 = vadd.f32 %v178_v45, %v941_v44 }
  0x41   :  { %v188_v47 = vrot.slane %v179_v46, 4 }
  0x43   :  { %v189_v48 = vadd.f32 %v188_v47, %v179_v46 }
  0x45   :  { %v190_v49 = vrot.slane %v189_v48, 2 }
  0x47   :  { %v191_v50 = vadd.f32 %v190_v49, %v189_v48 }
  0x49   :  { %v192_v51 = vrot.slane %v191_v50, 1 }
  0x4b   :  { %v193_v52 = vadd.f32 %v192_v51, %v191_v50 }
  0x4d   :  { %v945_v53 = vmul.f32 0.0052083335, %v193_v52 }
  0x4f   :  { %v948_v54 = vsub.f32 %v28_v0, %v945_v53  ;;  %v951_v55 = vsub.f32 %v29_v1, %v945_v53  ;;  %v954_v56 = vsub.f32 %v30_v2, %v945_v53  ;;  %v957_v57 = vsub.f32 %v31_v4, %v945_v53 }
  0x50   :  { %v964_v60 = vsub.f32 %v32_v6, %v945_v53  ;;  %v969_v62 = vsub.f32 %v33_v8, %v945_v53  ;;  %v974_v1 = vsub.f32 %v34_v10, %v945_v53  ;;  %v979_v4 = vsub.f32 %v35_v12, %v945_v53 }
  0x51   :  { %v260_v58 = vmul.f32 %v948_v54, %v948_v54  ;;  %v261_v59 = vmul.f32 %v951_v55, %v951_v55  ;;  %v262_v61 = vmul.f32 %v954_v56, %v954_v56  ;;  %v263_v63 = vmul.f32 %v957_v57, %v957_v57 }
  0x52   :  { %v264_v2 = vmul.f32 %v964_v60, %v964_v60  ;;  %v265_v5 = vmul.f32 %v969_v62, %v969_v62  ;;  %v984_v7 = vsub.f32 %v36_v14, %v945_v53  ;;  %v266_v8 = vmul.f32 %v974_v1, %v974_v1 }
  0x53   :  { %v292_v0 = vadd.f32 %v261_v59, %v260_v58  ;;  %v989_v10 = vsub.f32 %v37_v16, %v945_v53  ;;  %v267_v11 = vmul.f32 %v979_v4, %v979_v4  ;;  %v994_v12 = vsub.f32 %v38_v18, %v945_v53 }
  0x54   :  { %v268_v15 = vmul.f32 %v984_v7, %v984_v7  ;;  %v999_v14 = vsub.f32 %v39_v20, %v945_v53  ;;  %v1004_v16 = vsub.f32 %v40_v22, %v945_v53  ;;  %v1009_v18 = vsub.f32 %v41_v24, %v945_v53 }
  0x55   :  { %v293_v3 = vadd.f32 %v292_v0, %v262_v61  ;;  %v269_v19 = vmul.f32 %v989_v10, %v989_v10  ;;  %v270_v23 = vmul.f32 %v994_v12, %v994_v12  ;;  %v1015_v20 = vsub.f32 %v915_v26, %v945_v53 }
  0x56   :  { %v271_v27 = vmul.f32 %v999_v14, %v999_v14  ;;  %v272_v31 = vmul.f32 %v1004_v16, %v1004_v16  ;;  %v1021_v33 = vsub.f32 %v917_v28, %v945_v53  ;;  %v273_v24 = vmul.f32 %v1009_v18, %v1009_v18 }
  0x57   :  { %v294_v6 = vadd.f32 %v293_v3, %v263_v63  ;;  %v1027_v37 = vsub.f32 %v920_v30, %v945_v53  ;;  %v274_v26 = vmul.f32 %v1015_v20, %v1015_v20  ;;  %v1033_v41 = vsub.f32 %v923_v32, %v945_v53 }
  0x58   :  { %v275_v28 = vmul.f32 %v1021_v33, %v1021_v33  ;;  %v1039_v45 = vsub.f32 %v926_v34, %v945_v53  ;;  %v1045_v47 = vsub.f32 %v929_v36, %v945_v53  ;;  %v1051_v49 = vsub.f32 %v932_v38, %v945_v53 }
  0x59   :  { %v295_v9 = vadd.f32 %v294_v6, %v264_v2  ;;  %v276_v30 = vmul.f32 %v1027_v37, %v1027_v37  ;;  %v277_v32 = vmul.f32 %v1033_v41, %v1033_v41  ;;  %v1057_v51 = vsub.f32 %v935_v40, %v945_v53 }
  0x5a   :  { %v278_v34 = vmul.f32 %v1039_v45, %v1039_v45  ;;  %v279_v36 = vmul.f32 %v1045_v47, %v1045_v47  ;;  %v1063_v58 = vsub.f32 %v938_v42, %v945_v53  ;;  %v280_v38 = vmul.f32 %v1051_v49, %v1051_v49 }
  0x5b   :  { %v296_v13 = vadd.f32 %v295_v9, %v265_v5  ;;  %v1069_v61 = vsub.f32 %v941_v44, %v945_v53  ;;  %v281_v40 = vmul.f32 %v1057_v51, %v1057_v51 }
  0x5c   :  { %v282_v0 = vmul.f32 %v1063_v58, %v1063_v58 }
  0x5d   :  { %v297_v17 = vadd.f32 %v296_v13, %v266_v8  ;;  %v283_v42 = vmul.f32 %v1069_v61, %v1069_v61 }
  0x5f   :  { %v298_v21 = vadd.f32 %v297_v17, %v267_v11  ;;  %v381_v17 = vld [vmem:[%s1283_s1] sm:$0xff] }
  0x61   :  { %v299_v25 = vadd.f32 %v298_v21, %v268_v15  ;;  %v383_v21 = vld [vmem:[%s1283_s1 + $0x10] sm:$0xff] }
  0x63   :  { %v300_v29 = vadd.f32 %v299_v25, %v269_v19  ;;  %v382_v19 = vld [vmem:[%s1283_s1 + $0x8] sm:$0xff]  ;;  %v384_v25 = vld [vmem:[%s1283_s1 + $0x18] sm:$0xff] }
  0x65   :  { %v301_v22 = vadd.f32 %v300_v29, %v270_v23  ;;  %v795_v23 = vpack.c.bf16 %v382_v19, %v381_v17  ;;  %v385_v29 = vld [vmem:[%s1283_s1 + $0x20] sm:$0xff] }
  0x67   :  { %v302_v35 = vadd.f32 %v301_v22, %v271_v27  ;;  %v799_v27 = vpack.c.bf16 %v384_v25, %v383_v21  ;;  %796 = vmatprep.subr.bf16.mxu0 %v795_v23  ;;  %827 = vmatprep.subr.bf16.mxu1 %v795_v23 }
  0x68   :  { %798 = vmatpush3.bf16.msra.mxu0 %v795_v23  ;;  %835 = vmatpush3.bf16.msra.mxu1 %v795_v23 }
  0x69   :  { %v303_v39 = vadd.f32 %v302_v35, %v272_v31  ;;  %v386_v31 = vld [vmem:[%s1283_s1 + $0x28] sm:$0xff]  ;;  %800 = vmatprep.subr.bf16.mxu0 %v799_v27  ;;  %828 = vmatprep.subr.bf16.mxu1 %v799_v27  ;;  %v388_v35 = vld [vmem:[%s1283_s1 + $0x38] sm:$0xff] }
  0x6a   :  { %v803_v22 = vpack.c.bf16 %v386_v31, %v385_v29 }
  0x6b   :  { %v304_v43 = vadd.f32 %v303_v39, %v273_v24  ;;  %v387_v24 = vld [vmem:[%s1283_s1 + $0x30] sm:$0xff]  ;;  %v389_v39 = vld [vmem:[%s1283_s1 + $0x40] sm:$0xff] }
  0x6c   :  { %802 = vmatpush3.bf16.msra.mxu0 %v799_v27  ;;  %836 = vmatpush3.bf16.msra.mxu1 %v799_v27 }
  0x6d   :  { %v305_v46 = vadd.f32 %v304_v43, %v274_v26  ;;  %804 = vmatprep.subr.bf16.mxu0 %v803_v22  ;;  %829 = vmatprep.subr.bf16.mxu1 %v803_v22  ;;  %v807_v26 = vpack.c.bf16 %v388_v35, %v387_v24 }
  0x6f   :  { %v306_v48 = vadd.f32 %v305_v46, %v275_v28  ;;  %v390_v28 = vld [vmem:[%s1283_s1 + $0x48] sm:$0xff]  ;;  %v392_v46 = vld [vmem:[%s1283_s1 + $0x58] sm:$0xff] }
  0x70   :  { %806 = vmatpush3.bf16.msra.mxu0 %v803_v22  ;;  %837 = vmatpush3.bf16.msra.mxu1 %v803_v22  ;;  %v811_v43 = vpack.c.bf16 %v390_v28, %v389_v39 }
  0x71   :  { %v307_v50 = vadd.f32 %v306_v48, %v276_v30  ;;  %808 = vmatprep.subr.bf16.mxu0 %v807_v26  ;;  %830 = vmatprep.subr.bf16.mxu1 %v807_v26  ;;  %v391_v30 = vld [vmem:[%s1283_s1 + $0x50] sm:$0xff]  ;;  %v393_v48 = vld [vmem:[%s1283_s1 + $0x60] sm:$0xff] }
  0x73   :  { %v308_v52 = vadd.f32 %v307_v50, %v277_v32  ;;  %v815_v32 = vpack.c.bf16 %v392_v46, %v391_v30 }
  0x74   :  { %810 = vmatpush3.bf16.msra.mxu0 %v807_v26  ;;  %838 = vmatpush3.bf16.msra.mxu1 %v807_v26 }
  0x75   :  { %v309_v59 = vadd.f32 %v308_v52, %v278_v34  ;;  %812 = vmatprep.subr.bf16.mxu0 %v811_v43  ;;  %831 = vmatprep.subr.bf16.mxu1 %v811_v43  ;;  %v394_v34 = vld [vmem:[%s1283_s1 + $0x68] sm:$0xff]  ;;  %v396_v52 = vld [vmem:[%s1283_s1 + $0x78] sm:$0xff] }
  0x76   :  { %v819_v50 = vpack.c.bf16 %v394_v34, %v393_v48 }
  0x77   :  { %v310_v63 = vadd.f32 %v309_v59, %v279_v36  ;;  %v395_v36 = vld [vmem:[%s1283_s1 + $0x70] sm:$0xff] }
  0x78   :  { %814 = vmatpush3.bf16.msra.mxu0 %v811_v43  ;;  %839 = vmatpush3.bf16.msra.mxu1 %v811_v43 }
  0x79   :  { %v311_v2 = vadd.f32 %v310_v63, %v280_v38  ;;  %816 = vmatprep.subr.bf16.mxu0 %v815_v32  ;;  %832 = vmatprep.subr.bf16.mxu1 %v815_v32  ;;  %v823_v38 = vpack.c.bf16 %v396_v52, %v395_v36 }
  0x7b   :  { %v312_v3 = vadd.f32 %v311_v2, %v281_v40 }
  0x7c   :  { %818 = vmatpush3.bf16.msra.mxu0 %v815_v32  ;;  %840 = vmatpush3.bf16.msra.mxu1 %v815_v32 }
  0x7d   :  { %v313_v5 = vadd.f32 %v312_v3, %v282_v0  ;;  %820 = vmatprep.subr.bf16.mxu0 %v819_v50  ;;  %833 = vmatprep.subr.bf16.mxu1 %v819_v50 }
  0x7f   :  { %v314_v6 = vadd.f32 %v313_v5, %v283_v42 }
  0x80   :  { %822 = vmatpush3.bf16.msra.mxu0 %v819_v50  ;;  %841 = vmatpush3.bf16.msra.mxu1 %v819_v50 }
  0x81   :  { %323 = vadd.xlane.f32.xlu0 %v314_v6  ;;  %824 = vmatprep.subr.bf16.mxu0 %v823_v38 }
  0x82   :  { %834 = vmatprep.subr.bf16.mxu1 %v823_v38 }
  0x84   :  { %826 = vmatpush3.bf16.msra.mxu0 %v823_v38  ;;  %842 = vmatpush3.bf16.msra.mxu1 %v823_v38 }
 0x10e   :  { %v324_v8 = vpop.xlane.xlu0 %323 }
 0x10f   :  { %v325_v9 = vrot.slane %v324_v8, 4 }
 0x111   :  { %v326_v11 = vadd.f32 %v325_v9, %v324_v8 }
 0x113   :  { %v327_v44 = vrot.slane %v326_v11, 2 }
 0x115   :  { %v328_v53 = vadd.f32 %v327_v44, %v326_v11 }
 0x117   :  { %v329_v13 = vrot.slane %v328_v53, 1 }
 0x119   :  { %v330_v15 = vadd.f32 %v329_v13, %v328_v53 }
 0x11b   :  { %843 = vpush %v330_v15 }
 0x14c   :  { %s844_s0 = spop %843 }
 0x14d   :  { %s334_s26 = smul.f32 0.0052083335, %s844_s0 }
 0x14f   :  { %s335_s4 = sadd.f32 1e-06, %s334_s26 }
 0x151   :  { %v336_v59 = vstv %s335_s4 }
 0x152   :  { %852 = vrsqrt.f32 %v336_v59  ;;  %vm339_vm0 = vcmp.eq.f32.partialorder %v336_v59, inf  ;;  %v342_v0 = vand.u32 2147483648, %v336_v59  ;;  %vm341_vm1 = vcmp.eq.f32.partialorder %v336_v59, 0.0 }
 0x15c   :  { %v853_v40 = vpop.eup %852 }
 0x15d   :  { %v338_v63 = vmul.f32 %v853_v40, %v336_v59 }
 0x15f   :  { %v340_v2 = vsel %vm339_vm0, %v336_v59, %v338_v63 }
 0x160   :  { %v343_v42 = vsel %vm341_vm1, %v342_v0, %v340_v2 }
 0x161   :  { %845 = vpush %v343_v42 }
 0x192   :  { %s846_s5 = spop %845 }
 0x193   :  { %v345_v3 = vstv %s846_s5 }
 0x194   :  { %854 = vrcp.f32 %v345_v3 }
 0x19e   :  { %v855_v5 = vpop.eup %854 }
 0x19f   :  { %847 = vpush %v855_v5 }
 0x1d0   :  { %s848_s1 = spop %847 }
 0x1d1   :  { %v348_v6 = vstv %s848_s1 }
 0x1d2   :  { %v349_v8 = vmul.f32 %v348_v6, %v948_v54  ;;  %v365_v9 = vmul.f32 %v348_v6, %v1027_v37  ;;  %v350_v11 = vmul.f32 %v348_v6, %v951_v55  ;;  %v366_v44 = vmul.f32 %v348_v6, %v1033_v41 }
 0x1d3   :  { %v351_v53 = vmul.f32 %v348_v6, %v954_v56  ;;  %v367_v13 = vmul.f32 %v348_v6, %v1039_v45  ;;  %v352_v15 = vmul.f32 %v348_v6, %v957_v57  ;;  %v368_v54 = vmul.f32 %v348_v6, %v1045_v47 }
 0x1d4   :  { %747 = vmatprep.mubr.f32.mxu0 %v349_v8  ;;  %771 = vmatprep.mubr.f32.mxu1 %v365_v9  ;;  %v353_v37 = vmul.f32 %v348_v6, %v964_v60  ;;  %v369_v55 = vmul.f32 %v348_v6, %v1051_v49  ;;  %v354_v56 = vmul.f32 %v348_v6, %v969_v62  ;;  %v373_v49 = vmul.f32 0.0, %v348_v6 }
 0x1d5   :  { %748 = vmatmul.mubr.f32.vlgmr.msra.gmra.mrb[0].mxu0 %v350_v11  ;;  %772 = vmatmul.mubr.f32.vlgmr.msra.gmra.mrb[0].mxu1 %v366_v44  ;;  %v370_v41 = vmul.f32 %v348_v6, %v1057_v51  ;;  %v355_v45 = vmul.f32 %v348_v6, %v974_v1  ;;  %v371_v17 = vmul.f32 %v348_v6, %v1063_v58 }
 0x1d6   :  { %750 = vmatprep.mubr.f32.mxu0 %v351_v53  ;;  %774 = vmatprep.mubr.f32.mxu1 %v367_v13  ;;  %v356_v57 = vmul.f32 %v348_v6, %v979_v4  ;;  %v372_v60 = vmul.f32 %v348_v6, %v1069_v61  ;;  %v357_v47 = vmul.f32 %v348_v6, %v984_v7 }
 0x1d7   :  { %v358_v62 = vmul.f32 %v348_v6, %v989_v10  ;;  %v359_v1 = vmul.f32 %v348_v6, %v994_v12  ;;  %v360_v51 = vmul.f32 %v348_v6, %v999_v14  ;;  %v361_v4 = vmul.f32 %v348_v6, %v1004_v16  ;;  %v1152_v12 = vld [vmem:[%s1284_s2] ss:$0 sm:$0xff] }
 0x1d8   :  { %v362_v7 = vmul.f32 %v348_v6, %v1009_v18  ;;  %v363_v58 = vmul.f32 %v348_v6, %v1015_v20  ;;  %v364_v10 = vmul.f32 %v348_v6, %v1021_v33 }
 0x1d9   :  { %751 = vmatmul.mubr.f32.gmra.mrb[2].mxu0 %v352_v15  ;;  %775 = vmatmul.mubr.f32.gmra.mrb[2].mxu1 %v368_v54 }
 0x1da   :  { %753 = vmatprep.mubr.f32.mxu0 %v353_v37  ;;  %777 = vmatprep.mubr.f32.mxu1 %v369_v55 }
 0x1dd   :  { %754 = vmatmul.mubr.f32.gmra.mrb[4].mxu0 %v354_v56  ;;  %778 = vmatmul.mubr.f32.gmra.mrb[4].mxu1 %v370_v41 }
 0x1de   :  { %756 = vmatprep.mubr.f32.mxu0 %v355_v45  ;;  %780 = vmatprep.mubr.f32.mxu1 %v371_v17 }
 0x1e1   :  { %757 = vmatmul.mubr.f32.gmra.mrb[6].mxu0 %v356_v57  ;;  %781 = vmatmul.mubr.f32.gmra.mrb[6].mxu1 %v372_v60 }
 0x1e2   :  { %759 = vmatprep.mubr.f32.mxu0 %v357_v47  ;;  %783 = vmatprep.mubr.f32.mxu1 %v373_v49 }
 0x1e5   :  { %760 = vmatmul.mubr.f32.gmra.mrb[8].mxu0 %v358_v62  ;;  %784 = vmatmul.mubr.f32.gmra.mrb[8].mxu1 %v373_v49 }
 0x1e6   :  { %762 = vmatprep.mubr.f32.mxu0 %v359_v1  ;;  %786 = vmatprep.mubr.f32.mxu1 %v373_v49 }
 0x1e9   :  { %763 = vmatmul.mubr.f32.gmra.mrb[10].mxu0 %v360_v51  ;;  %787 = vmatmul.mubr.f32.gmra.mrb[10].mxu1 %v373_v49 }
 0x1ea   :  { %765 = vmatprep.mubr.f32.mxu0 %v361_v4  ;;  %789 = vmatprep.mubr.f32.mxu1 %v373_v49 }
 0x1ed   :  { %766 = vmatmul.mubr.f32.gmra.mrb[12].mxu0 %v362_v7  ;;  %790 = vmatmul.mubr.f32.gmra.mrb[12].mxu1 %v373_v49 }
 0x1ee   :  { %768 = vmatprep.mubr.f32.mxu0 %v363_v58  ;;  %792 = vmatprep.mubr.f32.mxu1 %v373_v49 }
 0x1f1   :  { %769 = vmatmul.mubr.f32.gmra.mrb[14].mxu0 %v364_v10  ;;  %793 = vmatmul.mubr.f32.gmra.mrb[14].mxu1 %v373_v49 }
 0x2a8   :  { %v749_v14 = vpop.f32.mrb[0].mxu0  ;;  %v773_v16 = vpop.f32.mrb[0].mxu1 }
 0x2a9   :  { %v476_v61 = vadd.f32 %v749_v14, %v1152_v12  ;;  %v556_v18 = vadd.f32 %v773_v16, %v1152_v12  ;;  %v470_v20 = vpop.f32.mrb[1].mxu0  ;;  %v550_v19 = vpop.f32.mrb[1].mxu1 }
 0x2aa   :  { %v471_v21 = vadd.f32 %v1152_v12, %v470_v20  ;;  %v551_v23 = vadd.f32 %v1152_v12, %v550_v19 }
 0x2ab   :  { %630 = vst [vmem:[%s1285_s3 + $0x8] sm:$0xff] %v476_v61  ;;  %646 = vst [vmem:[%s1285_s3 + $0x88] sm:$0xff] %v556_v18 }
 0x2ac   :  { %629 = vst [vmem:[%s1285_s3] sm:$0xff] %v471_v21  ;;  %645 = vst [vmem:[%s1285_s3 + $0x80] sm:$0xff] %v551_v23  ;;  %v752_v33 = vpop.f32.mrb[2].mxu0  ;;  %v776_v25 = vpop.f32.mrb[2].mxu1 }
 0x2ad   :  { %v486_v27 = vadd.f32 %v752_v33, %v1152_v12  ;;  %v566_v29 = vadd.f32 %v776_v25, %v1152_v12  ;;  %v480_v31 = vpop.f32.mrb[3].mxu0  ;;  %v560_v22 = vpop.f32.mrb[3].mxu1 }
 0x2ae   :  { %v481_v24 = vadd.f32 %v1152_v12, %v480_v31  ;;  %v561_v35 = vadd.f32 %v1152_v12, %v560_v22 }
 0x2af   :  { %632 = vst [vmem:[%s1285_s3 + $0x18] sm:$0xff] %v486_v27  ;;  %648 = vst [vmem:[%s1285_s3 + $0x98] sm:$0xff] %v566_v29 }
 0x2b0   :  { %631 = vst [vmem:[%s1285_s3 + $0x10] sm:$0xff] %v481_v24  ;;  %647 = vst [vmem:[%s1285_s3 + $0x90] sm:$0xff] %v561_v35  ;;  %v755_v26 = vpop.f32.mrb[4].mxu0  ;;  %v779_v39 = vpop.f32.mrb[4].mxu1 }
 0x2b1   :  { %v496_v28 = vadd.f32 %v755_v26, %v1152_v12  ;;  %v576_v43 = vadd.f32 %v779_v39, %v1152_v12  ;;  %v490_v30 = vpop.f32.mrb[5].mxu0  ;;  %v570_v46 = vpop.f32.mrb[5].mxu1 }
 0x2b2   :  { %v491_v32 = vadd.f32 %v1152_v12, %v490_v30  ;;  %v571_v48 = vadd.f32 %v1152_v12, %v570_v46 }
 0x2b3   :  { %634 = vst [vmem:[%s1285_s3 + $0x28] sm:$0xff] %v496_v28  ;;  %650 = vst [vmem:[%s1285_s3 + $0xa8] sm:$0xff] %v576_v43 }
 0x2b4   :  { %633 = vst [vmem:[%s1285_s3 + $0x20] sm:$0xff] %v491_v32  ;;  %649 = vst [vmem:[%s1285_s3 + $0xa0] sm:$0xff] %v571_v48  ;;  %v758_v34 = vpop.f32.mrb[6].mxu0  ;;  %v782_v50 = vpop.f32.mrb[6].mxu1 }
 0x2b5   :  { %v506_v36 = vadd.f32 %v758_v34, %v1152_v12  ;;  %v586_v52 = vadd.f32 %v782_v50, %v1152_v12  ;;  %v500_v38 = vpop.f32.mrb[7].mxu0  ;;  %v580_v59 = vpop.f32.mrb[7].mxu1 }
 0x2b6   :  { %v501_v40 = vadd.f32 %v1152_v12, %v500_v38  ;;  %v581_v63 = vadd.f32 %v1152_v12, %v580_v59 }
 0x2b7   :  { %636 = vst [vmem:[%s1285_s3 + $0x38] sm:$0xff] %v506_v36  ;;  %652 = vst [vmem:[%s1285_s3 + $0xb8] sm:$0xff] %v586_v52 }
 0x2b8   :  { %635 = vst [vmem:[%s1285_s3 + $0x30] sm:$0xff] %v501_v40  ;;  %651 = vst [vmem:[%s1285_s3 + $0xb0] sm:$0xff] %v581_v63  ;;  %v761_v0 = vpop.f32.mrb[8].mxu0  ;;  %v785_v2 = vpop.f32.mrb[8].mxu1 }
 0x2b9   :  { %v516_v42 = vadd.f32 %v761_v0, %v1152_v12  ;;  %v596_v3 = vadd.f32 %v785_v2, %v1152_v12  ;;  %v510_v5 = vpop.f32.mrb[9].mxu0  ;;  %v590_v6 = vpop.f32.mrb[9].mxu1 }
 0x2ba   :  { %v511_v8 = vadd.f32 %v1152_v12, %v510_v5  ;;  %v591_v9 = vadd.f32 %v1152_v12, %v590_v6 }
 0x2bb   :  { %638 = vst [vmem:[%s1285_s3 + $0x48] sm:$0xff] %v516_v42  ;;  %654 = vst [vmem:[%s1285_s3 + $0xc8] sm:$0xff] %v596_v3 }
 0x2bc   :  { %637 = vst [vmem:[%s1285_s3 + $0x40] sm:$0xff] %v511_v8  ;;  %653 = vst [vmem:[%s1285_s3 + $0xc0] sm:$0xff] %v591_v9  ;;  %v764_v11 = vpop.f32.mrb[10].mxu0  ;;  %v788_v44 = vpop.f32.mrb[10].mxu1 }
 0x2bd   :  { %v526_v53 = vadd.f32 %v764_v11, %v1152_v12  ;;  %v606_v13 = vadd.f32 %v788_v44, %v1152_v12  ;;  %v520_v15 = vpop.f32.mrb[11].mxu0  ;;  %v600_v54 = vpop.f32.mrb[11].mxu1 }
 0x2be   :  { %v521_v37 = vadd.f32 %v1152_v12, %v520_v15  ;;  %v601_v55 = vadd.f32 %v1152_v12, %v600_v54 }
 0x2bf   :  { %640 = vst [vmem:[%s1285_s3 + $0x58] sm:$0xff] %v526_v53  ;;  %656 = vst [vmem:[%s1285_s3 + $0xd8] sm:$0xff] %v606_v13 }
 0x2c0   :  { %639 = vst [vmem:[%s1285_s3 + $0x50] sm:$0xff] %v521_v37  ;;  %655 = vst [vmem:[%s1285_s3 + $0xd0] sm:$0xff] %v601_v55  ;;  %v767_v56 = vpop.f32.mrb[12].mxu0  ;;  %v791_v41 = vpop.f32.mrb[12].mxu1 }
 0x2c1   :  { %v536_v45 = vadd.f32 %v767_v56, %v1152_v12  ;;  %v616_v17 = vadd.f32 %v791_v41, %v1152_v12  ;;  %v530_v57 = vpop.f32.mrb[13].mxu0  ;;  %v610_v60 = vpop.f32.mrb[13].mxu1 }
 0x2c2   :  { %v531_v47 = vadd.f32 %v1152_v12, %v530_v57  ;;  %v611_v49 = vadd.f32 %v1152_v12, %v610_v60 }
 0x2c3   :  { %642 = vst [vmem:[%s1285_s3 + $0x68] sm:$0xff] %v536_v45  ;;  %658 = vst [vmem:[%s1285_s3 + $0xe8] sm:$0xff] %v616_v17 }
 0x2c4   :  { %641 = vst [vmem:[%s1285_s3 + $0x60] sm:$0xff] %v531_v47  ;;  %657 = vst [vmem:[%s1285_s3 + $0xe0] sm:$0xff] %v611_v49  ;;  %v770_v62 = vpop.f32.mrb[14].mxu0  ;;  %v794_v1 = vpop.f32.mrb[14].mxu1 }
 0x2c5   :  { %v546_v51 = vadd.f32 %v770_v62, %v1152_v12  ;;  %v626_v4 = vadd.f32 %v794_v1, %v1152_v12  ;;  %v540_v7 = vpop.f32.mrb[15].mxu0  ;;  %v620_v58 = vpop.f32.mrb[15].mxu1 }
 0x2c6   :  { %v541_v10 = vadd.f32 %v1152_v12, %v540_v7  ;;  %v621_v14 = vadd.f32 %v1152_v12, %v620_v58 }
 0x2c7   :  { %644 = vst [vmem:[%s1285_s3 + $0x78] sm:$0xff] %v546_v51  ;;  %660 = vst [vmem:[%s1285_s3 + $0xf8] sm:$0xff] %v626_v4 }
 0x2c8   :  { %643 = vst [vmem:[%s1285_s3 + $0x70] sm:$0xff] %v541_v10  ;;  %659 = vst [vmem:[%s1285_s3 + $0xf0] sm:$0xff] %v621_v14 }
 0x2c9   :  { %665 = vsyncpa [#allocation3], 1 }

</bundles_post_ra>
